<compile_context>
chip_gen: v7x
topology: tpu7x:2x2x1
jax: 0.10.0
libtpu: 0.0.40
codegen_flags: <defaults>
</compile_context>

<pallas_src>
import math
import functools

import jax
import jax.numpy as jnp
from jax.experimental import pallas as pl
from jax.experimental.pallas import tpu as pltpu


# --------------------------------------------------------------------------
# In-kernel helpers
# --------------------------------------------------------------------------
def _layer_norm(x, gamma, beta, eps=1e-5):
    # x: (S, D) f32; gamma/beta: (1, D) -- PyTorch nn.LayerNorm over last dim.
    mu = jnp.mean(x, axis=-1, keepdims=True)
    var = jnp.mean((x - mu) ** 2, axis=-1, keepdims=True)
    return (x - mu) * jax.lax.rsqrt(var + eps) * gamma + beta


# --------------------------------------------------------------------------
# Fused encoder kernel.
# grid = (B, L): one batch element per outer step, one encoder layer per inner
# step. The residual stream lives in an f32 VMEM scratch across the L axis.
# --------------------------------------------------------------------------
def encoder_kernel(x_ref, mb_ref,
                   wqkv_ref, bqkv_ref, wo_ref, bo_ref,
                   ln1g_ref, ln1b_ref, w1_ref, b1_ref, w2_ref, b2_ref,
                   ln2g_ref, ln2b_ref, fing_ref, finb_ref,
                   out_ref, x_scr, ctx_scr,
                   *, num_heads: int, d_k: int):
    f32, bf16 = jnp.float32, jnp.bfloat16
    _, S, D = x_ref.shape
    H = num_heads
    inv_sqrt_dk = 1.0 / math.sqrt(d_k)
    l = pl.program_id(1)

    # ---- initialize the VMEM-resident residual stream from the f32 input ----
    @pl.when(l == 0)
    def _():
        x_scr[...] = x_ref[0]

    x = x_scr[...]                       # (S, D) f32 residual stream
    mbias = mb_ref[0][None]              # (1, 1, S) additive mask bias (0 / -1e9)

    # ---- fused QKV projection: ONE (S,D)@(D,3D) MXU matmul ----
    qkv = (jnp.dot(x.astype(bf16), wqkv_ref[0], preferred_element_type=f32)
           + bqkv_ref[0]).astype(bf16)                                   # (S, 3D)

    def split_heads(base):               # static lane slices -> (H, S, d_k)
        return jnp.stack([qkv[:, base + h * d_k: base + (h + 1) * d_k]
                          for h in range(H)], axis=0)

    q = split_heads(0)
    k = split_heads(D)
    v = split_heads(2 * D)

    # ---- scaled dot-product attention, batched over heads ----
    s = jnp.einsum('hqd,hkd->hqk', q, k,
                   preferred_element_type=f32) * inv_sqrt_dk             # (H,S,S)
    s = s + mbias
    m = jnp.max(s, axis=-1, keepdims=True)
    p = jnp.exp(s - m)
    denom = jnp.sum(p, axis=-1, keepdims=True)
    p = (p * pl.reciprocal(denom, approx=True)).astype(bf16)
    # TODO(synk): attention/FFN/residual dropout are eval-mode identity.
    # TODO(synk): for S >~ 512 the (H,S,S) scores need a flash-style KV-tile
    # online-softmax inner loop to bound the quadratic VMEM footprint.

    ctx = jnp.einsum('hqk,hkd->hqd', p, v,
                     preferred_element_type=f32)                         # (H,S,dk)

    # ---- output projection: pack heads lane-dense, ONE (S,D)@(D,D) matmul ----
    for h in range(H):                   # static-slice stores, H*d_k == D
        ctx_scr[:, h * d_k:(h + 1) * d_k] = ctx[h].astype(bf16)
    attn = jnp.dot(ctx_scr[...], wo_ref[0],
                   preferred_element_type=f32) + bo_ref[0]               # (S, D)

    # ---- sublayer 1: post-norm residual ----
    x = _layer_norm(x + attn, ln1g_ref[0], ln1b_ref[0])

    # ---- position-wise feed-forward ----
    ff = jnp.dot(x.astype(bf16), w1_ref[0],
                 preferred_element_type=f32) + b1_ref[0]
    ff = jnp.maximum(ff, 0.0)
    ff = jnp.dot(ff.astype(bf16), w2_ref[0],
                 preferred_element_type=f32) + b2_ref[0]

    # ---- sublayer 2: post-norm residual ----
    x = _layer_norm(x + ff, ln2g_ref[0], ln2b_ref[0])
    x_scr[...] = x

    # ---- final Encoder.norm after the last layer, then write back ----
    @pl.when(l == pl.num_programs(1) - 1)
    def _():
        out_ref[0] = _layer_norm(x, fing_ref[...], finb_ref[...]).astype(out_ref.dtype)


# --------------------------------------------------------------------------
# Wrapper
# --------------------------------------------------------------------------
_PER_LAYER_KEYS = ("wqkv", "bqkv", "wo", "bo", "ln1_g", "ln1_b",
                   "w1", "b1", "w2", "b2", "ln2_g", "ln2_b")


def _vmem_limit_bytes() -> int:
    # Generation-aware VMEM budget: ~80% of physical per-core VMEM
    # (~53 MB on v7x's 64 MiB, ~107 MB on v5e/v6e's 128 MiB).
    try:
        cap = int(pltpu.get_tpu_info().vmem_capacity_bytes)
        return max(32 * 1024 * 1024, min(int(cap * 0.8), 110 * 1024 * 1024))
    except Exception:
        return 64 * 1024 * 1024


@functools.partial(jax.jit, static_argnames=("num_heads", "out_dtype"))
def encoder_forward(x, src_mask, packed, *, num_heads, out_dtype=jnp.float32):
    """Encoder.forward: all layers + final LayerNorm in one pallas_call."""
    B, S, D = x.shape
    L = packed["wqkv"].shape[0]
    d_k = D // num_heads

    # Hoisted mask preprocessing: additive bias, robust `< 0.5` test.
    mask_bias = jnp.where(src_mask < 0.5, -1.0e9, 0.0).astype(jnp.float32)

    per_layer = [packed[k] for k in _PER_LAYER_KEYS]
    final_np = [packed["fin_g"], packed["fin_b"]]

    def layer_spec(arr):                 # streamed per-layer weight block
        nd = arr.ndim
        return pl.BlockSpec((1,) + arr.shape[1:],
                            lambda b, l, _n=nd: (l,) + (0,) * (_n - 1))

    def const_spec(arr):                 # grid-invariant (final norm params)
        nd = arr.ndim
        return pl.BlockSpec(arr.shape, lambda b, l, _n=nd: (0,) * _n)

    in_specs = [pl.BlockSpec((1, S, D), lambda b, l: (b, 0, 0)),   # x (f32)
                pl.BlockSpec((1, 1, S), lambda b, l: (b, 0, 0))]   # mask bias
    in_specs += [layer_spec(w) for w in per_layer]
    in_specs += [const_spec(w) for w in final_np]

    kernel = functools.partial(encoder_kernel, num_heads=num_heads, d_k=d_k)

    # TODO(synk): for small B on v7x, add a second "parallel" grid axis
    # (query tiles / head groups) so both TensorCores have work.
    return pl.pallas_call(
        kernel,
        out_shape=jax.ShapeDtypeStruct((B, S, D), out_dtype),
        grid_spec=pltpu.PrefetchScalarGridSpec(
            num_scalar_prefetch=0,
            grid=(B, L),
            in_specs=in_specs,
            out_specs=pl.BlockSpec((1, S, D), lambda b, l: (b, 0, 0)),
            scratch_shapes=[pltpu.VMEM((S, D), jnp.float32),     # residual stream
                            pltpu.VMEM((S, D), jnp.bfloat16)]),  # merged context
        compiler_params=pltpu.CompilerParams(
            dimension_semantics=("parallel", "arbitrary"),
            vmem_limit_bytes=_vmem_limit_bytes()),
    )(x, mask_bias, *per_layer, *final_np)


# --------------------------------------------------------------------------
# Deterministic parameter init + packing into kernel layouts
# --------------------------------------------------------------------------
def init_params(key, n_blocks, d_model, num_heads, d_ff):
    def linear(key, d_in, d_out):        # PyTorch nn.Linear-style init; w is (in,out)
        kw, kb = jax.random.split(key)
        bound = 1.0 / math.sqrt(d_in)
        w = jax.random.uniform(kw, (d_in, d_out), jnp.float32, -bound, bound)
        b = jax.random.uniform(kb, (d_out,), jnp.float32, -bound, bound)
        return w, b

    per = {k: [] for k in _PER_LAYER_KEYS}
    for lk in jax.random.split(key, n_blocks):
        ks = jax.random.split(lk, 6)
        wq, bq = linear(ks[0], d_model, d_model)
        wk, bk = linear(ks[1], d_model, d_model)
        wv, bv = linear(ks[2], d_model, d_model)
        wo, bo = linear(ks[3], d_model, d_model)
        w1, b1 = linear(ks[4], d_model, d_ff)
        w2, b2 = linear(ks[5], d_ff, d_model)

        # Columns ordered [Q | K | V]; within each, (head, d_k) as in PyTorch.
        per["wqkv"].append(jnp.concatenate([wq, wk, wv], axis=1))      # (D, 3D)
        per["bqkv"].append(jnp.concatenate([bq, bk, bv]).reshape(1, 3 * d_model))
        per["wo"].append(wo)                                           # (D, D) (in,out)
        per["bo"].append(bo.reshape(1, d_model))
        per["ln1_g"].append(jnp.ones((1, d_model), jnp.float32))
        per["ln1_b"].append(jnp.zeros((1, d_model), jnp.float32))
        per["w1"].append(w1)                                           # (D, d_ff)
        per["b1"].append(b1.reshape(1, d_ff))
        per["w2"].append(w2)                                           # (d_ff, D)
        per["b2"].append(b2.reshape(1, d_model))
        per["ln2_g"].append(jnp.ones((1, d_model), jnp.float32))
        per["ln2_b"].append(jnp.zeros((1, d_model), jnp.float32))

    packed = {k: jnp.stack(v, axis=0) for k, v in per.items()}
    packed["fin_g"] = jnp.ones((1, d_model), jnp.float32)
    packed["fin_b"] = jnp.zeros((1, d_model), jnp.float32)

    # bf16 weights for the MXU matmuls; biases / LayerNorm params stay f32.
    for k in ("wqkv", "wo", "w1", "w2"):
        packed[k] = packed[k].astype(jnp.bfloat16)
    return packed


# --------------------------------------------------------------------------
# Main
# --------------------------------------------------------------------------
if __name__ == "__main__":
    B, S, D, H, D_FF, N_BLOCKS = 2, 8, 32, 4, 64, 2

    key = jax.random.PRNGKey(0)
    k_x, k_p = jax.random.split(key)

    x = jax.random.normal(k_x, (B, S, D), jnp.float32)
    # src_mask: (B, 1, S); 1.0 = attend, 0.0 = masked (last 2 keys of batch 1 masked)
    src_mask = jnp.ones((B, 1, S), jnp.float32).at[1, 0, -2:].set(0.0)

    params = init_params(k_p, N_BLOCKS, D, H, D_FF)

    out = encoder_forward(x, src_mask, params, num_heads=H)
    jax.block_until_ready(out)

    assert out.shape == (B, S, D) and out.dtype == jnp.float32
    assert bool(jnp.all(jnp.isfinite(out)))
    # TODO(synk): training-mode stochastic dropout masks were not reproduced
    # (eval-mode identity, as in model.eval()).
    print("KERNEL_OK")
</pallas_src>

<mosaic_0001>
module attributes {stable_mosaic.version = 11 : i64} {
  func.func @encoder_kernel(%arg0: i32, %arg1: i32, %arg2: memref<1x8x32xf32, #tpu.memory_space<vmem>>, %arg3: memref<1x1x8xf32, #tpu.memory_space<vmem>>, %arg4: memref<1x32x96xbf16, #tpu.memory_space<vmem>>, %arg5: memref<1x1x96xf32, #tpu.memory_space<vmem>>, %arg6: memref<1x32x32xbf16, #tpu.memory_space<vmem>>, %arg7: memref<1x1x32xf32, #tpu.memory_space<vmem>>, %arg8: memref<1x1x32xf32, #tpu.memory_space<vmem>>, %arg9: memref<1x1x32xf32, #tpu.memory_space<vmem>>, %arg10: memref<1x32x64xbf16, #tpu.memory_space<vmem>>, %arg11: memref<1x1x64xf32, #tpu.memory_space<vmem>>, %arg12: memref<1x64x32xbf16, #tpu.memory_space<vmem>>, %arg13: memref<1x1x32xf32, #tpu.memory_space<vmem>>, %arg14: memref<1x1x32xf32, #tpu.memory_space<vmem>>, %arg15: memref<1x1x32xf32, #tpu.memory_space<vmem>>, %arg16: memref<1x32xf32, #tpu.memory_space<vmem>>, %arg17: memref<1x32xf32, #tpu.memory_space<vmem>>, %arg18: memref<1x8x32xf32, #tpu.memory_space<vmem>>, %arg19: memref<8x32xf32, #tpu.memory_space<vmem>>, %arg20: memref<8x32xbf16, #tpu.memory_space<vmem>>) attributes {dimension_semantics = [#tpu.dimension_semantics<parallel>, #tpu.dimension_semantics<arbitrary>], iteration_bounds = array<i64: 2, 2>, scalar_prefetch = 0 : i64, scratch_operands = 2 : i64, tpu.core_type = #tpu.core_type<tc>, window_params = [{transform_indices = @transform_0, window_bounds = array<i64: 1, 8, 32>}, {transform_indices = @transform_1, window_bounds = array<i64: 1, 1, 8>}, {transform_indices = @transform_2, window_bounds = array<i64: 1, 32, 96>}, {transform_indices = @transform_3, window_bounds = array<i64: 1, 1, 96>}, {transform_indices = @transform_4, window_bounds = array<i64: 1, 32, 32>}, {transform_indices = @transform_5, window_bounds = array<i64: 1, 1, 32>}, {transform_indices = @transform_6, window_bounds = array<i64: 1, 1, 32>}, {transform_indices = @transform_7, window_bounds = array<i64: 1, 1, 32>}, {transform_indices = @transform_8, window_bounds = array<i64: 1, 32, 64>}, {transform_indices = @transform_9, window_bounds = array<i64: 1, 1, 64>}, {transform_indices = @transform_10, window_bounds = array<i64: 1, 64, 32>}, {transform_indices = @transform_11, window_bounds = array<i64: 1, 1, 32>}, {transform_indices = @transform_12, window_bounds = array<i64: 1, 1, 32>}, {transform_indices = @transform_13, window_bounds = array<i64: 1, 1, 32>}, {pipeline_mode = #tpu.pipeline_mode<synchronous>, transform_indices = @transform_14, window_bounds = array<i64: 1, 32>}, {pipeline_mode = #tpu.pipeline_mode<synchronous>, transform_indices = @transform_15, window_bounds = array<i64: 1, 32>}, {transform_indices = @transform_16, window_bounds = array<i64: 1, 8, 32>}]} {
    %c0_i32 = arith.constant 0 : i32
    %0 = arith.cmpi eq, %arg1, %c0_i32 : i32
    %1 = arith.extui %0 : i1 to i32
    %c0_i32_0 = arith.constant 0 : i32
    %2 = arith.cmpi ne, %1, %c0_i32_0 : i32
    scf.if %2 {
      %c0_70 = arith.constant 0 : index
      %c0_71 = arith.constant 0 : index
      %c0_72 = arith.constant 0 : index
      %160 = vector.load %arg2[%c0_70, %c0_71, %c0_72] : memref<1x8x32xf32, #tpu.memory_space<vmem>>, vector<1x8x32xf32>
      %161 = vector.shape_cast %160 : vector<1x8x32xf32> to vector<8x32xf32>
      %c0_73 = arith.constant 0 : index
      %c0_74 = arith.constant 0 : index
      %162 = vector.load %arg19[%c0_73, %c0_74] : memref<8x32xf32, #tpu.memory_space<vmem>>, vector<8x32xf32>
      tpu.vector_store %arg19[%c0_73, %c0_74], %161 {strides = array<i32>} : memref<8x32xf32, #tpu.memory_space<vmem>>, vector<8x32xf32>,
    } else {
    }
    %c0 = arith.constant 0 : index
    %c0_1 = arith.constant 0 : index
    %3 = vector.load %arg19[%c0, %c0_1] : memref<8x32xf32, #tpu.memory_space<vmem>>, vector<8x32xf32>
    %c0_2 = arith.constant 0 : index
    %c0_3 = arith.constant 0 : index
    %c0_4 = arith.constant 0 : index
    %4 = vector.load %arg3[%c0_2, %c0_3, %c0_4] : memref<1x1x8xf32, #tpu.memory_space<vmem>>, vector<1x1x8xf32>
    %5 = vector.shape_cast %4 : vector<1x1x8xf32> to vector<1x8xf32>
    %6 = vector.shape_cast %5 : vector<1x8xf32> to vector<1x1x8xf32>
    %7 = arith.truncf %3 : vector<8x32xf32> to vector<8x32xbf16>
    %c0_5 = arith.constant 0 : index
    %c0_6 = arith.constant 0 : index
    %c0_7 = arith.constant 0 : index
    %8 = vector.load %arg4[%c0_5, %c0_6, %c0_7] : memref<1x32x96xbf16, #tpu.memory_space<vmem>>, vector<1x32x96xbf16>
    %9 = vector.shape_cast %8 : vector<1x32x96xbf16> to vector<32x96xbf16>
    %cst = arith.constant dense<0.000000e+00> : vector<8x96xf32>
    %10 = tpu.matmul %7, %9, %cst {dimension_numbers = #tpu.dot_dimension_numbers<[1], [0], [0], [1], [0, 0, 1, 1], [], []>} : vector<8x32xbf16>, vector<32x96xbf16>, vector<8x96xf32> -> vector<8x96xf32>
    %c0_8 = arith.constant 0 : index
    %c0_9 = arith.constant 0 : index
    %c0_10 = arith.constant 0 : index
    %11 = vector.load %arg5[%c0_8, %c0_9, %c0_10] : memref<1x1x96xf32, #tpu.memory_space<vmem>>, vector<1x1x96xf32>
    %12 = vector.shape_cast %11 : vector<1x1x96xf32> to vector<1x96xf32>
    %13 = vector.broadcast %12 : vector<1x96xf32> to vector<8x96xf32>
    %14 = arith.addf %10, %13 : vector<8x96xf32>
    %15 = arith.truncf %14 : vector<8x96xf32> to vector<8x96xbf16>
    %16 = vector.extract_strided_slice %15 {offsets = [0, 0], sizes = [8, 8], strides = [1, 1]} : vector<8x96xbf16> to vector<8x8xbf16>
    %17 = vector.extract_strided_slice %15 {offsets = [0, 8], sizes = [8, 8], strides = [1, 1]} : vector<8x96xbf16> to vector<8x8xbf16>
    %18 = vector.extract_strided_slice %15 {offsets = [0, 16], sizes = [8, 8], strides = [1, 1]} : vector<8x96xbf16> to vector<8x8xbf16>
    %19 = vector.extract_strided_slice %15 {offsets = [0, 24], sizes = [8, 8], strides = [1, 1]} : vector<8x96xbf16> to vector<8x8xbf16>
    %20 = vector.shape_cast %16 : vector<8x8xbf16> to vector<1x8x8xbf16>
    %21 = vector.shape_cast %17 : vector<8x8xbf16> to vector<1x8x8xbf16>
    %22 = vector.shape_cast %18 : vector<8x8xbf16> to vector<1x8x8xbf16>
    %23 = vector.shape_cast %19 : vector<8x8xbf16> to vector<1x8x8xbf16>
    %24 = tpu.concatenate %20, %21, %22, %23 in 0 : vector<1x8x8xbf16>, vector<1x8x8xbf16>, vector<1x8x8xbf16>, vector<1x8x8xbf16> -> vector<4x8x8xbf16>
    %25 = vector.extract_strided_slice %15 {offsets = [0, 32], sizes = [8, 8], strides = [1, 1]} : vector<8x96xbf16> to vector<8x8xbf16>
    %26 = vector.extract_strided_slice %15 {offsets = [0, 40], sizes = [8, 8], strides = [1, 1]} : vector<8x96xbf16> to vector<8x8xbf16>
    %27 = vector.extract_strided_slice %15 {offsets = [0, 48], sizes = [8, 8], strides = [1, 1]} : vector<8x96xbf16> to vector<8x8xbf16>
    %28 = vector.extract_strided_slice %15 {offsets = [0, 56], sizes = [8, 8], strides = [1, 1]} : vector<8x96xbf16> to vector<8x8xbf16>
    %29 = vector.shape_cast %25 : vector<8x8xbf16> to vector<1x8x8xbf16>
    %30 = vector.shape_cast %26 : vector<8x8xbf16> to vector<1x8x8xbf16>
    %31 = vector.shape_cast %27 : vector<8x8xbf16> to vector<1x8x8xbf16>
    %32 = vector.shape_cast %28 : vector<8x8xbf16> to vector<1x8x8xbf16>
    %33 = tpu.concatenate %29, %30, %31, %32 in 0 : vector<1x8x8xbf16>, vector<1x8x8xbf16>, vector<1x8x8xbf16>, vector<1x8x8xbf16> -> vector<4x8x8xbf16>
    %34 = vector.extract_strided_slice %15 {offsets = [0, 64], sizes = [8, 8], strides = [1, 1]} : vector<8x96xbf16> to vector<8x8xbf16>
    %35 = vector.extract_strided_slice %15 {offsets = [0, 72], sizes = [8, 8], strides = [1, 1]} : vector<8x96xbf16> to vector<8x8xbf16>
    %36 = vector.extract_strided_slice %15 {offsets = [0, 80], sizes = [8, 8], strides = [1, 1]} : vector<8x96xbf16> to vector<8x8xbf16>
    %37 = vector.extract_strided_slice %15 {offsets = [0, 88], sizes = [8, 8], strides = [1, 1]} : vector<8x96xbf16> to vector<8x8xbf16>
    %38 = vector.shape_cast %34 : vector<8x8xbf16> to vector<1x8x8xbf16>
    %39 = vector.shape_cast %35 : vector<8x8xbf16> to vector<1x8x8xbf16>
    %40 = vector.shape_cast %36 : vector<8x8xbf16> to vector<1x8x8xbf16>
    %41 = vector.shape_cast %37 : vector<8x8xbf16> to vector<1x8x8xbf16>
    %42 = tpu.concatenate %38, %39, %40, %41 in 0 : vector<1x8x8xbf16>, vector<1x8x8xbf16>, vector<1x8x8xbf16>, vector<1x8x8xbf16> -> vector<4x8x8xbf16>
    "tpu.trace_start"() <{level = 10 : i32, message = "hqd,hkd->hqk"}> : () -> ()
    %cst_11 = arith.constant dense<0.000000e+00> : vector<4x8x8xf32>
    %43 = tpu.matmul %24, %33, %cst_11 {dimension_numbers = #tpu.dot_dimension_numbers<[2], [2], [1], [1], [0, 0, 0, 1, 1, 1], [0], [0]>} : vector<4x8x8xbf16>, vector<4x8x8xbf16>, vector<4x8x8xf32> -> vector<4x8x8xf32>
    "tpu.trace_stop"() : () -> ()
    %cst_12 = arith.constant 0.353553385 : f32
    %44 = vector.broadcast %cst_12 : f32 to vector<4x8x8xf32>
    %45 = arith.mulf %43, %44 : vector<4x8x8xf32>
    %46 = vector.broadcast %6 : vector<1x1x8xf32> to vector<4x8x8xf32>
    %47 = arith.addf %45, %46 : vector<4x8x8xf32>
    %cst_13 = arith.constant dense<0xFF800000> : vector<4x8xf32>
    %48 = vector.multi_reduction <maximumf>, %47, %cst_13 [2] : vector<4x8x8xf32> to vector<4x8xf32>
    %49 = vector.shape_cast %48 : vector<4x8xf32> to vector<4x8x1xf32>
    %50 = vector.broadcast %49 : vector<4x8x1xf32> to vector<4x8x8xf32>
    %51 = arith.subf %47, %50 : vector<4x8x8xf32>
    %52 = math.exp %51 : vector<4x8x8xf32>
    %cst_14 = arith.constant dense<0.000000e+00> : vector<4x8xf32>
    %53 = vector.multi_reduction <add>, %52, %cst_14 [2] : vector<4x8x8xf32> to vector<4x8xf32>
    %54 = vector.shape_cast %53 : vector<4x8xf32> to vector<4x8x1xf32>
    %55 = tpu.reciprocal %54 {approx = true} : vector<4x8x1xf32> -> vector<4x8x1xf32>
    %56 = vector.broadcast %55 : vector<4x8x1xf32> to vector<4x8x8xf32>
    %57 = arith.mulf %52, %56 : vector<4x8x8xf32>
    %58 = arith.truncf %57 : vector<4x8x8xf32> to vector<4x8x8xbf16>
    "tpu.trace_start"() <{level = 10 : i32, message = "hqk,hkd->hqd"}> : () -> ()
    %cst_15 = arith.constant dense<0.000000e+00> : vector<4x8x8xf32>
    %59 = tpu.matmul %58, %42, %cst_15 {dimension_numbers = #tpu.dot_dimension_numbers<[2], [1], [1], [2], [0, 0, 0, 1, 1, 2], [0], [0]>} : vector<4x8x8xbf16>, vector<4x8x8xbf16>, vector<4x8x8xf32> -> vector<4x8x8xf32>
    "tpu.trace_stop"() : () -> ()
    %60 = vector.extract_strided_slice %59 {offsets = [0, 0, 0], sizes = [1, 8, 8], strides = [1, 1, 1]} : vector<4x8x8xf32> to vector<1x8x8xf32>
    %61 = vector.shape_cast %60 : vector<1x8x8xf32> to vector<8x8xf32>
    %62 = arith.truncf %61 : vector<8x8xf32> to vector<8x8xbf16>
    %c0_16 = arith.constant 0 : index
    %c0_17 = arith.constant 0 : index
    %63 = vector.load %arg20[%c0_16, %c0_17] : memref<8x32xbf16, #tpu.memory_space<vmem>>, vector<8x8xbf16>
    tpu.vector_store %arg20[%c0_16, %c0_17], %62 {strides = array<i32>} : memref<8x32xbf16, #tpu.memory_space<vmem>>, vector<8x8xbf16>,
    %64 = vector.extract_strided_slice %59 {offsets = [1, 0, 0], sizes = [1, 8, 8], strides = [1, 1, 1]} : vector<4x8x8xf32> to vector<1x8x8xf32>
    %65 = vector.shape_cast %64 : vector<1x8x8xf32> to vector<8x8xf32>
    %66 = arith.truncf %65 : vector<8x8xf32> to vector<8x8xbf16>
    %c0_18 = arith.constant 0 : index
    %c8 = arith.constant 8 : index
    %67 = vector.load %arg20[%c0_18, %c8] : memref<8x32xbf16, #tpu.memory_space<vmem>>, vector<8x8xbf16>
    tpu.vector_store %arg20[%c0_18, %c8], %66 {strides = array<i32>} : memref<8x32xbf16, #tpu.memory_space<vmem>>, vector<8x8xbf16>,
    %68 = vector.extract_strided_slice %59 {offsets = [2, 0, 0], sizes = [1, 8, 8], strides = [1, 1, 1]} : vector<4x8x8xf32> to vector<1x8x8xf32>
    %69 = vector.shape_cast %68 : vector<1x8x8xf32> to vector<8x8xf32>
    %70 = arith.truncf %69 : vector<8x8xf32> to vector<8x8xbf16>
    %c0_19 = arith.constant 0 : index
    %c16 = arith.constant 16 : index
    %71 = vector.load %arg20[%c0_19, %c16] : memref<8x32xbf16, #tpu.memory_space<vmem>>, vector<8x8xbf16>
    tpu.vector_store %arg20[%c0_19, %c16], %70 {strides = array<i32>} : memref<8x32xbf16, #tpu.memory_space<vmem>>, vector<8x8xbf16>,
    %72 = vector.extract_strided_slice %59 {offsets = [3, 0, 0], sizes = [1, 8, 8], strides = [1, 1, 1]} : vector<4x8x8xf32> to vector<1x8x8xf32>
    %73 = vector.shape_cast %72 : vector<1x8x8xf32> to vector<8x8xf32>
    %74 = arith.truncf %73 : vector<8x8xf32> to vector<8x8xbf16>
    %c0_20 = arith.constant 0 : index
    %c24 = arith.constant 24 : index
    %75 = vector.load %arg20[%c0_20, %c24] : memref<8x32xbf16, #tpu.memory_space<vmem>>, vector<8x8xbf16>
    tpu.vector_store %arg20[%c0_20, %c24], %74 {strides = array<i32>} : memref<8x32xbf16, #tpu.memory_space<vmem>>, vector<8x8xbf16>,
    %c0_21 = arith.constant 0 : index
    %c0_22 = arith.constant 0 : index
    %76 = vector.load %arg20[%c0_21, %c0_22] : memref<8x32xbf16, #tpu.memory_space<vmem>>, vector<8x32xbf16>
    %c0_23 = arith.constant 0 : index
    %c0_24 = arith.constant 0 : index
    %c0_25 = arith.constant 0 : index
    %77 = vector.load %arg6[%c0_23, %c0_24, %c0_25] : memref<1x32x32xbf16, #tpu.memory_space<vmem>>, vector<1x32x32xbf16>
    %78 = vector.shape_cast %77 : vector<1x32x32xbf16> to vector<32x32xbf16>
    %cst_26 = arith.constant dense<0.000000e+00> : vector<8x32xf32>
    %79 = tpu.matmul %76, %78, %cst_26 {dimension_numbers = #tpu.dot_dimension_numbers<[1], [0], [0], [1], [0, 0, 1, 1], [], []>} : vector<8x32xbf16>, vector<32x32xbf16>, vector<8x32xf32> -> vector<8x32xf32>
    %c0_27 = arith.constant 0 : index
    %c0_28 = arith.constant 0 : index
    %c0_29 = arith.constant 0 : index
    %80 = vector.load %arg7[%c0_27, %c0_28, %c0_29] : memref<1x1x32xf32, #tpu.memory_space<vmem>>, vector<1x1x32xf32>
    %81 = vector.shape_cast %80 : vector<1x1x32xf32> to vector<1x32xf32>
    %82 = vector.broadcast %81 : vector<1x32xf32> to vector<8x32xf32>
    %83 = arith.addf %79, %82 : vector<8x32xf32>
    %84 = arith.addf %3, %83 : vector<8x32xf32>
    %c0_30 = arith.constant 0 : index
    %c0_31 = arith.constant 0 : index
    %c0_32 = arith.constant 0 : index
    %85 = vector.load %arg8[%c0_30, %c0_31, %c0_32] : memref<1x1x32xf32, #tpu.memory_space<vmem>>, vector<1x1x32xf32>
    %86 = vector.shape_cast %85 : vector<1x1x32xf32> to vector<1x32xf32>
    %c0_33 = arith.constant 0 : index
    %c0_34 = arith.constant 0 : index
    %c0_35 = arith.constant 0 : index
    %87 = vector.load %arg9[%c0_33, %c0_34, %c0_35] : memref<1x1x32xf32, #tpu.memory_space<vmem>>, vector<1x1x32xf32>
    %88 = vector.shape_cast %87 : vector<1x1x32xf32> to vector<1x32xf32>
    %cst_36 = arith.constant dense<0.000000e+00> : vector<8xf32>
    %89 = vector.multi_reduction <add>, %84, %cst_36 [1] : vector<8x32xf32> to vector<8xf32>
    %90 = vector.shape_cast %89 : vector<8xf32> to vector<8x1xf32>
    %cst_37 = arith.constant 3.200000e+01 : f32
    %91 = vector.broadcast %cst_37 : f32 to vector<8x1xf32>
    %92 = arith.divf %90, %91 : vector<8x1xf32>
    %93 = vector.broadcast %92 : vector<8x1xf32> to vector<8x32xf32>
    %94 = arith.subf %84, %93 : vector<8x32xf32>
    %95 = arith.mulf %94, %94 : vector<8x32xf32>
    %cst_38 = arith.constant dense<0.000000e+00> : vector<8xf32>
    %96 = vector.multi_reduction <add>, %95, %cst_38 [1] : vector<8x32xf32> to vector<8xf32>
    %97 = vector.shape_cast %96 : vector<8xf32> to vector<8x1xf32>
    %cst_39 = arith.constant 3.200000e+01 : f32
    %98 = vector.broadcast %cst_39 : f32 to vector<8x1xf32>
    %99 = arith.divf %97, %98 : vector<8x1xf32>
    %100 = vector.broadcast %92 : vector<8x1xf32> to vector<8x32xf32>
    %101 = arith.subf %84, %100 : vector<8x32xf32>
    %cst_40 = arith.constant 9.99999974E-6 : f32
    %102 = vector.broadcast %cst_40 : f32 to vector<8x1xf32>
    %103 = arith.addf %99, %102 : vector<8x1xf32>
    %104 = math.rsqrt %103 : vector<8x1xf32>
    %105 = vector.broadcast %104 : vector<8x1xf32> to vector<8x32xf32>
    %106 = arith.mulf %101, %105 : vector<8x32xf32>
    %107 = vector.broadcast %86 : vector<1x32xf32> to vector<8x32xf32>
    %108 = arith.mulf %106, %107 : vector<8x32xf32>
    %109 = vector.broadcast %88 : vector<1x32xf32> to vector<8x32xf32>
    %110 = arith.addf %108, %109 : vector<8x32xf32>
    %111 = arith.truncf %110 : vector<8x32xf32> to vector<8x32xbf16>
    %c0_41 = arith.constant 0 : index
    %c0_42 = arith.constant 0 : index
    %c0_43 = arith.constant 0 : index
    %112 = vector.load %arg10[%c0_41, %c0_42, %c0_43] : memref<1x32x64xbf16, #tpu.memory_space<vmem>>, vector<1x32x64xbf16>
    %113 = vector.shape_cast %112 : vector<1x32x64xbf16> to vector<32x64xbf16>
    %cst_44 = arith.constant dense<0.000000e+00> : vector<8x64xf32>
    %114 = tpu.matmul %111, %113, %cst_44 {dimension_numbers = #tpu.dot_dimension_numbers<[1], [0], [0], [1], [0, 0, 1, 1], [], []>} : vector<8x32xbf16>, vector<32x64xbf16>, vector<8x64xf32> -> vector<8x64xf32>
    %c0_45 = arith.constant 0 : index
    %c0_46 = arith.constant 0 : index
    %c0_47 = arith.constant 0 : index
    %115 = vector.load %arg11[%c0_45, %c0_46, %c0_47] : memref<1x1x64xf32, #tpu.memory_space<vmem>>, vector<1x1x64xf32>
    %116 = vector.shape_cast %115 : vector<1x1x64xf32> to vector<1x64xf32>
    %117 = vector.broadcast %116 : vector<1x64xf32> to vector<8x64xf32>
    %118 = arith.addf %114, %117 : vector<8x64xf32>
    %cst_48 = arith.constant 0.000000e+00 : f32
    %119 = vector.broadcast %cst_48 : f32 to vector<8x64xf32>
    %120 = arith.maximumf %118, %119 : vector<8x64xf32>
    %121 = arith.truncf %120 : vector<8x64xf32> to vector<8x64xbf16>
    %c0_49 = arith.constant 0 : index
    %c0_50 = arith.constant 0 : index
    %c0_51 = arith.constant 0 : index
    %122 = vector.load %arg12[%c0_49, %c0_50, %c0_51] : memref<1x64x32xbf16, #tpu.memory_space<vmem>>, vector<1x64x32xbf16>
    %123 = vector.shape_cast %122 : vector<1x64x32xbf16> to vector<64x32xbf16>
    %cst_52 = arith.constant dense<0.000000e+00> : vector<8x32xf32>
    %124 = tpu.matmul %121, %123, %cst_52 {dimension_numbers = #tpu.dot_dimension_numbers<[1], [0], [0], [1], [0, 0, 1, 1], [], []>} : vector<8x64xbf16>, vector<64x32xbf16>, vector<8x32xf32> -> vector<8x32xf32>
    %c0_53 = arith.constant 0 : index
    %c0_54 = arith.constant 0 : index
    %c0_55 = arith.constant 0 : index
    %125 = vector.load %arg13[%c0_53, %c0_54, %c0_55] : memref<1x1x32xf32, #tpu.memory_space<vmem>>, vector<1x1x32xf32>
    %126 = vector.shape_cast %125 : vector<1x1x32xf32> to vector<1x32xf32>
    %127 = vector.broadcast %126 : vector<1x32xf32> to vector<8x32xf32>
    %128 = arith.addf %124, %127 : vector<8x32xf32>
    %129 = arith.addf %110, %128 : vector<8x32xf32>
    %c0_56 = arith.constant 0 : index
    %c0_57 = arith.constant 0 : index
    %c0_58 = arith.constant 0 : index
    %130 = vector.load %arg14[%c0_56, %c0_57, %c0_58] : memref<1x1x32xf32, #tpu.memory_space<vmem>>, vector<1x1x32xf32>
    %131 = vector.shape_cast %130 : vector<1x1x32xf32> to vector<1x32xf32>
    %c0_59 = arith.constant 0 : index
    %c0_60 = arith.constant 0 : index
    %c0_61 = arith.constant 0 : index
    %132 = vector.load %arg15[%c0_59, %c0_60, %c0_61] : memref<1x1x32xf32, #tpu.memory_space<vmem>>, vector<1x1x32xf32>
    %133 = vector.shape_cast %132 : vector<1x1x32xf32> to vector<1x32xf32>
    %cst_62 = arith.constant dense<0.000000e+00> : vector<8xf32>
    %134 = vector.multi_reduction <add>, %129, %cst_62 [1] : vector<8x32xf32> to vector<8xf32>
    %135 = vector.shape_cast %134 : vector<8xf32> to vector<8x1xf32>
    %cst_63 = arith.constant 3.200000e+01 : f32
    %136 = vector.broadcast %cst_63 : f32 to vector<8x1xf32>
    %137 = arith.divf %135, %136 : vector<8x1xf32>
    %138 = vector.broadcast %137 : vector<8x1xf32> to vector<8x32xf32>
    %139 = arith.subf %129, %138 : vector<8x32xf32>
    %140 = arith.mulf %139, %139 : vector<8x32xf32>
    %cst_64 = arith.constant dense<0.000000e+00> : vector<8xf32>
    %141 = vector.multi_reduction <add>, %140, %cst_64 [1] : vector<8x32xf32> to vector<8xf32>
    %142 = vector.shape_cast %141 : vector<8xf32> to vector<8x1xf32>
    %cst_65 = arith.constant 3.200000e+01 : f32
    %143 = vector.broadcast %cst_65 : f32 to vector<8x1xf32>
    %144 = arith.divf %142, %143 : vector<8x1xf32>
    %145 = vector.broadcast %137 : vector<8x1xf32> to vector<8x32xf32>
    %146 = arith.subf %129, %145 : vector<8x32xf32>
    %cst_66 = arith.constant 9.99999974E-6 : f32
    %147 = vector.broadcast %cst_66 : f32 to vector<8x1xf32>
    %148 = arith.addf %144, %147 : vector<8x1xf32>
    %149 = math.rsqrt %148 : vector<8x1xf32>
    %150 = vector.broadcast %149 : vector<8x1xf32> to vector<8x32xf32>
    %151 = arith.mulf %146, %150 : vector<8x32xf32>
    %152 = vector.broadcast %131 : vector<1x32xf32> to vector<8x32xf32>
    %153 = arith.mulf %151, %152 : vector<8x32xf32>
    %154 = vector.broadcast %133 : vector<1x32xf32> to vector<8x32xf32>
    %155 = arith.addf %153, %154 : vector<8x32xf32>
    %c0_67 = arith.constant 0 : index
    %c0_68 = arith.constant 0 : index
    %156 = vector.load %arg19[%c0_67, %c0_68] : memref<8x32xf32, #tpu.memory_space<vmem>>, vector<8x32xf32>
    tpu.vector_store %arg19[%c0_67, %c0_68], %155 {strides = array<i32>} : memref<8x32xf32, #tpu.memory_space<vmem>>, vector<8x32xf32>,
    %c1_i32 = arith.constant 1 : i32
    %157 = arith.cmpi eq, %arg1, %c1_i32 : i32
    %158 = arith.extui %157 : i1 to i32
    %c0_i32_69 = arith.constant 0 : i32
    %159 = arith.cmpi ne, %158, %c0_i32_69 : i32
    scf.if %159 {
      %c0_70 = arith.constant 0 : index
      %c0_71 = arith.constant 0 : index
      %160 = vector.load %arg16[%c0_70, %c0_71] : memref<1x32xf32, #tpu.memory_space<vmem>>, vector<1x32xf32>
      %c0_72 = arith.constant 0 : index
      %c0_73 = arith.constant 0 : index
      %161 = vector.load %arg17[%c0_72, %c0_73] : memref<1x32xf32, #tpu.memory_space<vmem>>, vector<1x32xf32>
      %cst_74 = arith.constant dense<0.000000e+00> : vector<8xf32>
      %162 = vector.multi_reduction <add>, %155, %cst_74 [1] : vector<8x32xf32> to vector<8xf32>
      %163 = vector.shape_cast %162 : vector<8xf32> to vector<8x1xf32>
      %cst_75 = arith.constant 3.200000e+01 : f32
      %164 = vector.broadcast %cst_75 : f32 to vector<8x1xf32>
      %165 = arith.divf %163, %164 : vector<8x1xf32>
      %166 = vector.broadcast %165 : vector<8x1xf32> to vector<8x32xf32>
      %167 = arith.subf %155, %166 : vector<8x32xf32>
      %168 = arith.mulf %167, %167 : vector<8x32xf32>
      %cst_76 = arith.constant dense<0.000000e+00> : vector<8xf32>
      %169 = vector.multi_reduction <add>, %168, %cst_76 [1] : vector<8x32xf32> to vector<8xf32>
      %170 = vector.shape_cast %169 : vector<8xf32> to vector<8x1xf32>
      %cst_77 = arith.constant 3.200000e+01 : f32
      %171 = vector.broadcast %cst_77 : f32 to vector<8x1xf32>
      %172 = arith.divf %170, %171 : vector<8x1xf32>
      %173 = vector.broadcast %165 : vector<8x1xf32> to vector<8x32xf32>
      %174 = arith.subf %155, %173 : vector<8x32xf32>
      %cst_78 = arith.constant 9.99999974E-6 : f32
      %175 = vector.broadcast %cst_78 : f32 to vector<8x1xf32>
      %176 = arith.addf %172, %175 : vector<8x1xf32>
      %177 = math.rsqrt %176 : vector<8x1xf32>
      %178 = vector.broadcast %177 : vector<8x1xf32> to vector<8x32xf32>
      %179 = arith.mulf %174, %178 : vector<8x32xf32>
      %180 = vector.broadcast %160 : vector<1x32xf32> to vector<8x32xf32>
      %181 = arith.mulf %179, %180 : vector<8x32xf32>
      %182 = vector.broadcast %161 : vector<1x32xf32> to vector<8x32xf32>
      %183 = arith.addf %181, %182 : vector<8x32xf32>
      %c0_79 = arith.constant 0 : index
      %c0_80 = arith.constant 0 : index
      %c0_81 = arith.constant 0 : index
      %184 = vector.load %arg18[%c0_79, %c0_80, %c0_81] : memref<1x8x32xf32, #tpu.memory_space<vmem>>, vector<1x8x32xf32>
      %185 = vector.shape_cast %184 : vector<1x8x32xf32> to vector<8x32xf32>
      %186 = vector.shape_cast %183 : vector<8x32xf32> to vector<1x8x32xf32>
      tpu.vector_store %arg18[%c0_79, %c0_80, %c0_81], %186 {strides = array<i32>} : memref<1x8x32xf32, #tpu.memory_space<vmem>>, vector<1x8x32xf32>,
    } else {
    }
    return
  }
  func.func @transform_0(%arg0: i32, %arg1: i32) -> (i32, i32, i32) {
    %c0_i32 = arith.constant 0 : i32
    %c0_i32_0 = arith.constant 0 : i32
    %c0_i32_1 = arith.constant 0 : i32
    return %arg0, %c0_i32, %c0_i32_0 : i32, i32, i32
  }
  func.func @transform_1(%arg0: i32, %arg1: i32) -> (i32, i32, i32) {
    %c0_i32 = arith.constant 0 : i32
    %c0_i32_0 = arith.constant 0 : i32
    %c0_i32_1 = arith.constant 0 : i32
    return %arg0, %c0_i32, %c0_i32_0 : i32, i32, i32
  }
  func.func @transform_2(%arg0: i32, %arg1: i32) -> (i32, i32, i32) {
    %c0_i32 = arith.constant 0 : i32
    %c0_i32_0 = arith.constant 0 : i32
    %c0_i32_1 = arith.constant 0 : i32
    return %arg1, %c0_i32, %c0_i32_0 : i32, i32, i32
  }
  func.func @transform_3(%arg0: i32, %arg1: i32) -> (i32, i32, i32) {
    %c0_i32 = arith.constant 0 : i32
    %c0_i32_0 = arith.constant 0 : i32
    %c0_i32_1 = arith.constant 0 : i32
    return %arg1, %c0_i32, %c0_i32_0 : i32, i32, i32
  }
  func.func @transform_4(%arg0: i32, %arg1: i32) -> (i32, i32, i32) {
    %c0_i32 = arith.constant 0 : i32
    %c0_i32_0 = arith.constant 0 : i32
    %c0_i32_1 = arith.constant 0 : i32
    return %arg1, %c0_i32, %c0_i32_0 : i32, i32, i32
  }
  func.func @transform_5(%arg0: i32, %arg1: i32) -> (i32, i32, i32) {
    %c0_i32 = arith.constant 0 : i32
    %c0_i32_0 = arith.constant 0 : i32
    %c0_i32_1 = arith.constant 0 : i32
    return %arg1, %c0_i32, %c0_i32_0 : i32, i32, i32
  }
  func.func @transform_6(%arg0: i32, %arg1: i32) -> (i32, i32, i32) {
    %c0_i32 = arith.constant 0 : i32
    %c0_i32_0 = arith.constant 0 : i32
    %c0_i32_1 = arith.constant 0 : i32
    return %arg1, %c0_i32, %c0_i32_0 : i32, i32, i32
  }
  func.func @transform_7(%arg0: i32, %arg1: i32) -> (i32, i32, i32) {
    %c0_i32 = arith.constant 0 : i32
    %c0_i32_0 = arith.constant 0 : i32
    %c0_i32_1 = arith.constant 0 : i32
    return %arg1, %c0_i32, %c0_i32_0 : i32, i32, i32
  }
  func.func @transform_8(%arg0: i32, %arg1: i32) -> (i32, i32, i32) {
    %c0_i32 = arith.constant 0 : i32
    %c0_i32_0 = arith.constant 0 : i32
    %c0_i32_1 = arith.constant 0 : i32
    return %arg1, %c0_i32, %c0_i32_0 : i32, i32, i32
  }
  func.func @transform_9(%arg0: i32, %arg1: i32) -> (i32, i32, i32) {
    %c0_i32 = arith.constant 0 : i32
    %c0_i32_0 = arith.constant 0 : i32
    %c0_i32_1 = arith.constant 0 : i32
    return %arg1, %c0_i32, %c0_i32_0 : i32, i32, i32
  }
  func.func @transform_10(%arg0: i32, %arg1: i32) -> (i32, i32, i32) {
    %c0_i32 = arith.constant 0 : i32
    %c0_i32_0 = arith.constant 0 : i32
    %c0_i32_1 = arith.constant 0 : i32
    return %arg1, %c0_i32, %c0_i32_0 : i32, i32, i32
  }
  func.func @transform_11(%arg0: i32, %arg1: i32) -> (i32, i32, i32) {
    %c0_i32 = arith.constant 0 : i32
    %c0_i32_0 = arith.constant 0 : i32
    %c0_i32_1 = arith.constant 0 : i32
    return %arg1, %c0_i32, %c0_i32_0 : i32, i32, i32
  }
  func.func @transform_12(%arg0: i32, %arg1: i32) -> (i32, i32, i32) {
    %c0_i32 = arith.constant 0 : i32
    %c0_i32_0 = arith.constant 0 : i32
    %c0_i32_1 = arith.constant 0 : i32
    return %arg1, %c0_i32, %c0_i32_0 : i32, i32, i32
  }
  func.func @transform_13(%arg0: i32, %arg1: i32) -> (i32, i32, i32) {
    %c0_i32 = arith.constant 0 : i32
    %c0_i32_0 = arith.constant 0 : i32
    %c0_i32_1 = arith.constant 0 : i32
    return %arg1, %c0_i32, %c0_i32_0 : i32, i32, i32
  }
  func.func @transform_14(%arg0: i32, %arg1: i32) -> (i32, i32) {
    %c0_i32 = arith.constant 0 : i32
    %c0_i32_0 = arith.constant 0 : i32
    %c0_i32_1 = arith.constant 0 : i32
    return %c0_i32, %c0_i32_0 : i32, i32
  }
  func.func @transform_15(%arg0: i32, %arg1: i32) -> (i32, i32) {
    %c0_i32 = arith.constant 0 : i32
    %c0_i32_0 = arith.constant 0 : i32
    %c0_i32_1 = arith.constant 0 : i32
    return %c0_i32, %c0_i32_0 : i32, i32
  }
  func.func @transform_16(%arg0: i32, %arg1: i32) -> (i32, i32, i32) {
    %c0_i32 = arith.constant 0 : i32
    %c0_i32_0 = arith.constant 0 : i32
    %c0_i32_1 = arith.constant 0 : i32
    return %arg0, %c0_i32, %c0_i32_0 : i32, i32, i32
  }
}

</mosaic_0001>

<bundles_post_ra>
// kernel: encoder_forward.1
= control target key start
LH: loop header
LB: loop body
LE: loop exit
PB: predicated region body
PF: predicated region fallthrough
CT: control target
= control target key end

     0   :  { %s4305_s0 = inlined_call_operand.hbm [shape: f32[2,8,32], index: 0, kind: input, shape index: {}]   ;;  %s4306_s1 = inlined_call_operand.hbm [shape: f32[2,1,8], index: 1, kind: input, shape index: {}]   ;;  %s4307_s2 = inlined_call_operand.hbm [shape: bf16[2,32,96], index: 2, kind: input, shape index: {}]   ;;  %s4308_s3 = inlined_call_operand.hbm [shape: f32[2,1,96], index: 3, kind: input, shape index: {}]   ;;  %s4309_s4 = inlined_call_operand.hbm [shape: bf16[2,32,32], index: 4, kind: input, shape index: {}]   ;;  %s4310_s5 = inlined_call_operand.hbm [shape: f32[2,1,32], index: 5, kind: input, shape index: {}]   ;;  %s4311_s6 = inlined_call_operand.hbm [shape: f32[2,1,32], index: 6, kind: input, shape index: {}]   ;;  %s4312_s7 = inlined_call_operand.hbm [shape: f32[2,1,32], index: 7, kind: input, shape index: {}]   ;;  %s4313_s8 = inlined_call_operand.hbm [shape: bf16[2,32,64], index: 8, kind: input, shape index: {}]   ;;  %s4314_s9 = inlined_call_operand.hbm [shape: f32[2,1,64], index: 9, kind: input, shape index: {}]   ;;  %s4315_s10 = inlined_call_operand.hbm [shape: bf16[2,64,32], index: 10, kind: input, shape index: {}]   ;;  %s4316_s11 = inlined_call_operand.hbm [shape: f32[2,1,32], index: 11, kind: input, shape index: {}]   ;;  %s4317_s12 = inlined_call_operand.hbm [shape: f32[2,1,32], index: 12, kind: input, shape index: {}]   ;;  %s4318_s13 = inlined_call_operand.hbm [shape: f32[2,1,32], index: 13, kind: input, shape index: {}]   ;;  %s4319_s14 = inlined_call_operand.hbm [shape: f32[1,32], index: 14, kind: input, shape index: {}]   ;;  %s4320_s15 = inlined_call_operand.hbm [shape: f32[1,32], index: 15, kind: input, shape index: {}]   ;;  %s4321_s16 = inlined_call_operand.hbm [shape: f32[2,8,32], index: 16, kind: output, shape index: {}]  }
   0x1   :  { %4357 = sst [smem:[#allocation57_spill]] %s4305_s0 }
   0x2   :  { %4358 = sst [smem:[#allocation58_spill]] %s4306_s1 }
   0x3   :  { %4359 = sst [smem:[#allocation59_spill]] %s4307_s2 }
   0x4   :  { %4360 = sst [smem:[#allocation60_spill]] %s4308_s3 }
   0x5   :  { %4361 = sst [smem:[#allocation61_spill]] %s4309_s4 }
   0x6   :  { %4362 = sst [smem:[#allocation62_spill]] %s4310_s5 }
   0x7   :  { %4363 = sst [smem:[#allocation63_spill]] %s4311_s6 }
   0x8   :  { %4364 = sst [smem:[#allocation64_spill]] %s4312_s7 }
   0x9   :  { %4365 = sst [smem:[#allocation65_spill]] %s4313_s8 }
   0xa   :  { %4366 = sst [smem:[#allocation66_spill]] %s4314_s9 }
   0xb   :  { %4367 = sst [smem:[#allocation67_spill]] %s4315_s10 }
   0xc   :  { %4368 = sst [smem:[#allocation68_spill]] %s4316_s11 }
   0xd   :  { %4369 = sst [smem:[#allocation69_spill]] %s4317_s12 }
   0xe   :  { %4370 = sst [smem:[#allocation70_spill]] %s4318_s13 }
   0xf   :  { %4371 = sst [smem:[#allocation71_spill]] %s4319_s14 }
  0x10   :  { %4372 = sst [smem:[#allocation72_spill]] %s4320_s15 }
  0x11   :  { %4373 = sst [smem:[#allocation73_spill]] %s4321_s16 }
  0x12   :  { %21 = vsyncpa [#allocation5], 0 }
  0x13   :  { %23 = vsyncpa [#allocation5 + $0x1], 0 }
  0x14   :  { %24 = vsyncpa [#allocation8], 0 }
  0x15   :  { %26 = vsyncpa [#allocation8 + $0x1], 0 }
  0x16   :  { %27 = vsyncpa [#allocation11], 0 }
  0x17   :  { %29 = vsyncpa [#allocation11 + $0x1], 0 }
  0x18   :  { %30 = vsyncpa [#allocation14], 0 }
  0x19   :  { %32 = vsyncpa [#allocation14 + $0x1], 0 }
  0x1a   :  { %33 = vsyncpa [#allocation17], 0 }
  0x1b   :  { %35 = vsyncpa [#allocation17 + $0x1], 0 }
  0x1c   :  { %36 = vsyncpa [#allocation20], 0 }
  0x1d   :  { %38 = vsyncpa [#allocation20 + $0x1], 0 }
  0x1e   :  { %39 = vsyncpa [#allocation23], 0 }
  0x1f   :  { %41 = vsyncpa [#allocation23 + $0x1], 0 }
  0x20   :  { %42 = vsyncpa [#allocation26], 0 }
  0x21   :  { %44 = vsyncpa [#allocation26 + $0x1], 0 }
  0x22   :  { %45 = vsyncpa [#allocation29], 0 }
  0x23   :  { %46 = vsyncpa [#allocation6], 0 }
  0x24   :  { %48 = vsyncpa [#allocation6 + $0x1], 0  ;;  %s3384_s21 = smov 0   ;;  %s3386_s22 = smov 0  }
  0x25   :  { %s3388_s23 = smov 0   ;;  %s3390_s24 = smov 0  }
  0x26   :  { %s3392_s25 = smov 0   ;;  %s3394_s26 = smov 0  }
  0x27   :  { %s3396_s27 = smov 0   ;;  %s3398_s28 = smov 0  }
  0x28   :  { %s3400_s29 = smov 0   ;;  %s3402_s30 = smov 0  }
  0x29   :  { %s3404_s0 = smov 0  }
  0x2a LB: > { %4374 = sst [smem:[#allocation43_spill]] %s3232_s22  ;;  %s3440_s17 = sadd.s32 4294967295, %s3268_s0   ;;  %s3268_s0 = sphi %s3404_s0, %s54_s0   ;;  %s3264_s30 = sphi %s3402_s30, %s4461_s30   ;;  %s3260_s29 = sphi %s3400_s29, %s4467_s29   ;;  %s3256_s28 = sphi %s3398_s28, %s4459_s28   ;;  %s3252_s27 = sphi %s3396_s27, %s4466_s27   ;;  %s3248_s26 = sphi %s3394_s26, %s4458_s26   ;;  %s3244_s25 = sphi %s3392_s25, %s4465_s25   ;;  %s3240_s24 = sphi %s3390_s24, %s4464_s24   ;;  %s3236_s23 = sphi %s3388_s23, %s4463_s23   ;;  %s3232_s22 = sphi %s3386_s22, %s4462_s22   ;;  %s3228_s21 = sphi %s3384_s21, %s4455_s21  }
  0x2b   : > { %4375 = sst [smem:[#allocation44_spill]] %s3240_s24  ;;  %s2270_s18 = sadd.s32 4294967294, %s3268_s0  }
  0x2c   : > { %4376 = sst [smem:[#allocation45_spill]] %s3248_s26  ;;  %s63_s19 = sadd.s32 1, %s3260_s29 }
  0x2d   : > { %4377 = sst [smem:[#allocation46_spill]] %s3252_s27  ;;  %s66_s20 = sadd.s32 1, %s3264_s30 }
  0x2e   : > { %4378 = sst [smem:[#allocation47_spill]] %s3256_s28  ;;  %p64_p0 = scmp.ge.s32.totalorder %s63_s19, 2 }
  0x2f   : > { %4379 = sst [smem:[#allocation48_spill]] %s3264_s30  ;;  %s73_s16 = sadd.s32 1, %s3248_s26 }
  0x30   : > { %4380 = sst [smem:[#allocation49_spill]] %s3440_s17  ;;  %p4332_p1 = scmp.ne.s32.totalorder %s3248_s26, %s3244_s25 }
  0x31   : > { %p81_p2 = scmp.eq.s32.totalorder %s3268_s0, 0  ;;  %s4469_s19 = smov (%p64_p0, %s63_s19), 0 }
  0x32   : > { %4381 = sst [smem:[#allocation50_spill]] %s4469_s19  ;;  %s4471_s20 = smov (!%p64_p0, %s66_s20), %s3264_s30 }
  0x33   : > { %p3457_p3 = por %p81_p2, %p4332_p1  ;;  %p4331_p4 = scmp.ne.s32.totalorder %s3244_s25, %s3240_s24 }
  0x34   : > { %p68_p5 = scmp.ge.s32.totalorder %s4471_s20, 2  ;;  %p4343_p6 = scmp.eq.s32.totalorder %s3440_s17, 0 }
  0x35   : > { %s4382_s28 = scalar_select %p3457_p3, 1, 0 }
  0x36   : > { %s122_s27 = ssub.s32 %s3260_s29, %s4469_s19  ;;  %s125_s13 = sadd.s32 1, %s3236_s23 }
  0x37   : > { %s4473_s20 = smov (%p68_p5, %s4471_s20), 0  ;;  %p3474_p7 = por %p4343_p6, %p4331_p4 }
  0x38   : > { %4383 = sst [smem:[#allocation51_spill]] %s4473_s20  ;;  %p123_p8 = scmp.eq.s32.totalorder %s122_s27, 0 }
  0x39   : > { %s4384_s12 = scalar_select %p3474_p7, 1, 0 }
  0x3a   : > { %s70_s10 = ssub.s32 %s3264_s30, %s4473_s20  ;;  %p132_p9 = scmp.ne.s32.totalorder %s3236_s23, %s3232_s22 }
  0x3b   : > { %p71_p10 = scmp.eq.s32.totalorder %s70_s10, 0  ;;  %p138_p11 = scmp.ne.s32.totalorder %s3232_s22, %s3228_s21 }
  0x3c   : > { %s3485_s19 = scalar_select %p123_p8, %s3236_s23, %s125_s13  }
  0x3d   : > { %s3488_s8 = scalar_select %p71_p10, %s3248_s26, %s73_s16  }
  0x3e   : > { %4385 = sst [smem:[#allocation52_spill]] %s3485_s19  ;;  %p3492_p12 = por %p132_p9, %p81_p2 }
  0x3f   : > { %4386 = sst [smem:[#allocation53_spill]] %s3488_s8  ;;  %p3498_p13 = por %p138_p11, %p4343_p6 }
  0x40   : > { %s4387_s6 = scalar_select %p3492_p12, 1, 0 }
  0x41   : > { %s4388_s4 = scalar_select %p3498_p13, 1, 0 }
  0x42   : > { %p490_p0 = scmp.eq.s32.totalorder %s3440_s17, 3  ;;  %p496_p5 = scmp.eq.s32.totalorder %s2270_s18, 3 }
  0x43   : > { %4389 = sst [smem:[#allocation54_spill]] %s4388_s4  ;;  %p2271_p4 = scmp.ge.s32.totalorder %s3268_s0, 1 }
  0x44   : > { %p503_p1 = scmp.lt.s32.totalorder %s3268_s0, 5  ;;  %p4390_p7 = scmp.ne.s32.totalorder %s3248_s26, %s3244_s25 }
  0x45   : > { %p4393_p10 = scmp.ne.s32.totalorder %s3244_s25, %s3240_s24  ;;  %s3270_s21 = smov [#allocation27]  }
  0x46   : > { %p3508_p8 = por %p490_p0, %p4390_p7  ;;  %p3519_p2 = pnand %p2271_p4, %p503_p1 }
  0x47   : > { %p3515_p3 = por %p496_p5, %p4393_p10  ;;  %s516_s27 = sshll.u32 %s3270_s21, 4  ;;  %s517_s27 = int_to_ptr.vmem [resolvable:$true] %s516_s27 }
  0x48   : > { %s4391_s10 = scalar_select %p3508_p8, 1, 0 }
  0x49   : > { %s4394_s13 = scalar_select %p3515_p3, 1, 0 }
  0x4a   : > { %4392 = sst [smem:[#allocation55_spill]] %s4391_s10  ;;  %p2508_p9 = pneg %p3519_p2 }
  0x4b   : > { %4395 = sst [smem:[#allocation56_spill]] %s4394_s13  ;;  %s3271_s18 = smov [#allocation28]  }
  0x4c   : > { %s4396_s16 = scalar_select %p3519_p2, 1, 0 }
  0x4d   : > { %s527_s20 = sshll.u32 %s3271_s18, 4  ;;  %p3527_p7 = pnand %p2508_p9, %p4343_p6  ;;  %s3531_s20 = int_to_ptr.vmem [resolvable:$true] %s527_s20 }
  0x4e   : > { %s4398_s14 = sld [smem:[#allocation71_spill]] }
  0x4f   : > { %p2660_p4 = pneg %p3527_p7 }
  0x54   : > { %s2658_s24 = scalar_lea.hbm %s4398_s14, 16 }
  0x55   : > { %p2659_p1 = scmp.ne.s32.totalorder %s4398_s14, %s2658_s24  ;;  %p2665_p5 = scmp.lt.u32.totalorder %s2658_s24, %s4398_s14 }
  0x57   : > { %p2661_p11 = pnand %p2660_p4, %p2659_p1 }
  0x59   : > { %p2662_p0 = pneg %p2661_p11 }
  0x5b   : > { %p2667_p10 = pnand %p2665_p5, %p2662_p0 }
  0x5d   : > { %2670 = shalt.err (!%p2667_p10)
}
  0x5e   : > { %s2671_s22 = scalar_lea.vmem %s517_s27, 16  ;;  %s2678_s4 = scalar_lea.vmem %s517_s27, 32 }
  0x5f   : > { %p2672_p9 = scmp.ne.s32.totalorder %s517_s27, %s2671_s22  ;;  %p2679_p8 = scmp.lt.s32.totalorder %s517_s27, %s517_s27 }
  0x60   : > { %p2680_p13 = scmp.lt.s32.totalorder %s2678_s4, %s2671_s22 }
  0x61   : > { %p2674_p6 = pnand %p2672_p9, %p2660_p4 }
  0x62   : > { %p2681_p2 = por %p2680_p13, %p2679_p8 }
  0x63   : > { %p2675_p3 = pneg %p2674_p6 }
  0x65   : > { %p2682_p12 = pnand %p2681_p2, %p2675_p3 }
  0x67   : > { %2685 = shalt.err (!%p2682_p12)
}
  0x68   : > { %2511 = dma.hbm_to_vmem [thread:$0]  (!%p3527_p7), %s4398_s14, 16, %s517_s27, [#allocation26]  }
  0x69   : > { %s4399_s15 = sld [smem:[#allocation72_spill]] }
  0x6f   : > { %s2686_s21 = scalar_lea.hbm %s4399_s15, 16 }
  0x70   : > { %p2687_p6 = scmp.ne.s32.totalorder %s4399_s15, %s2686_s21  ;;  %p2693_p12 = scmp.lt.u32.totalorder %s2686_s21, %s4399_s15 }
  0x72   : > { %p2689_p13 = pnand %p2687_p6, %p2660_p4 }
  0x74   : > { %p2690_p3 = pneg %p2689_p13 }
  0x76   : > { %p2695_p8 = pnand %p2693_p12, %p2690_p3 }
  0x78   : > { %2698 = shalt.err (!%p2695_p8)
}
  0x79   : > { %s2699_s27 = scalar_lea.vmem %s3531_s20, 16  ;;  %s2706_s17 = scalar_lea.vmem %s3531_s20, 32 }
  0x7a   : > { %p2700_p2 = scmp.ne.s32.totalorder %s3531_s20, %s2699_s27  ;;  %p2707_p0 = scmp.lt.s32.totalorder %s3531_s20, %s3531_s20 }
  0x7b   : > { %p2708_p5 = scmp.lt.s32.totalorder %s2706_s17, %s2699_s27 }
  0x7c   : > { %p2702_p1 = pnand %p2700_p2, %p2660_p4 }
  0x7d   : > { %p2709_p10 = por %p2708_p5, %p2707_p0 }
  0x7e   : > { %p2703_p11 = pneg %p2702_p1 }
  0x80   : > { %p2710_p9 = pnand %p2709_p10, %p2703_p11 }
  0x82   : > { %2713 = shalt.err (!%p2710_p9)
}
  0x83   : > { %2514 = dma.hbm_to_vmem [thread:$0]  (!%p3527_p7), %s4399_s15, 16, %s3531_s20, [#allocation29]  }
  0x84   : > { %p2274_p6 = scmp.ge.s32.totalorder %s3268_s0, 4 }
  0x85   : > { %s3583_s24 = sand.u32 (!%p2274_p6), 1, %s3248_s26   ;;  %s3586_s13 = sand.u32 (!%p2274_p6), 1, %s3268_s0  }
  0x86   : > { %534 = sbr.rel (%p2274_p6) target bundleno = 521 (0x209), region = 24  ;;  %s2277_s21 = sshll.u32 (!%p2274_p6), %s3264_s30, 4 }
  0x87   : > { %s559_s8 = scalar_lea.vmem (!%p2274_p6), [#allocation7], %s3583_s24  ;;  %s4400_s1 = sld [smem:[#allocation58_spill]] (!%p2274_p6) }
  0x88   : > { %s566_s18 = sshll.u32 (!%p2274_p6), %s559_s8, 4  ;;  %s4350_s27 = scalar_lea.sflag (!%p2274_p6), [#allocation8], %s3586_s13  ;;  %s567_s18 = int_to_ptr.vmem [resolvable:$true] %s566_s18 }
  0x89   : > { %p4401_p4 = scmp.ne.s32.totalorder (!%p2274_p6), %s4382_s28, 0 }
  0x8d   : > { %s3593_s20 = scalar_lea.hbm %s4400_s1, %s2277_s21  ;;  %s2718_s8 = scalar_lea.hbm %s4400_s1, 32 }
  0x8e   : > { %s2714_s17 = scalar_lea.hbm %s3593_s20, 16  ;;  %p2719_p12 = scmp.lt.u32.totalorder %s3593_s20, %s4400_s1 }
  0x8f   : > { %p2715_p7 = scmp.ne.s32.totalorder %s3593_s20, %s2714_s17  ;;  %p2720_p8 = scmp.lt.u32.totalorder %s2718_s8, %s2714_s17 }
  0x90   : > { %p2722_p1 = scmp.lt.u32.totalorder %s2714_s17, %s3593_s20 }
  0x91   : > { %p2716_p13 = pnand %p2715_p7, %p4401_p4  ;;  %p2721_p2 = por %p2720_p8, %p2719_p12 }
  0x93   : > { %p2717_p3 = pneg %p2716_p13  ;;  %p2723_p11 = por %p2722_p1, %p2721_p2 }
  0x95   : > { %p2724_p0 = pnand %p2723_p11, %p2717_p3 }
  0x97   : > { %2727 = shalt.err (!%p2724_p0)
}
  0x98   : > { %s2728_s21 = scalar_lea.vmem %s567_s18, 16  ;;  %s3272_s22 = smov [#allocation7]  }
  0x99   : > { %p2729_p5 = scmp.ne.s32.totalorder %s567_s18, %s2728_s21  ;;  %s2732_s4 = sshll.u32 %s3272_s22, 4  ;;  %s2733_s4 = int_to_ptr.vmem [resolvable:$false] %s2732_s4 }
  0x9a   : > { %s2734_s19 = scalar_lea.vmem %s2733_s4, 32  ;;  %p2735_p6 = scmp.lt.s32.totalorder %s567_s18, %s2733_s4 }
  0x9b   : > { %p2730_p10 = pnand %p2729_p5, %p4401_p4  ;;  %p2736_p7 = scmp.lt.s32.totalorder %s2734_s19, %s2728_s21 }
  0x9d   : > { %p2731_p9 = pneg %p2730_p10  ;;  %p2737_p13 = por %p2736_p7, %p2735_p6 }
  0x9f   : > { %p2738_p8 = pnand %p2737_p13, %p2731_p9 }
  0xa1   : > { %2741 = shalt.err (!%p2738_p8)
}
  0xa2   : > { %2475 = dma.hbm_to_vmem [thread:$0]  (%p4401_p4), %s3593_s20, 16, %s567_s18, %s4350_s27  }
  0xa3   : > { %s3616_s14 = sand.u32 1, %s3236_s23   ;;  %s3619_s15 = sshll.u32 %s3260_s29, 4 }
  0xa4   : > { %s4402_s3 = sld [smem:[#allocation60_spill]]  ;;  %s597_s21 = scalar_lea.vmem [#allocation10], %s3616_s14 }
  0xa5   : > { %s604_s22 = sshll.u32 %s597_s21, 4  ;;  %p4403_p12 = scmp.ne.s32.totalorder %s4387_s6, 0  ;;  %s605_s22 = int_to_ptr.vmem [resolvable:$true] %s604_s22 }
  0xaa   : > { %s3625_s8 = scalar_lea.hbm %s4402_s3, %s3619_s15  ;;  %s2746_s27 = scalar_lea.hbm %s4402_s3, 32 }
  0xab   : > { %s2742_s18 = scalar_lea.hbm %s3625_s8, 16  ;;  %p2747_p11 = scmp.lt.u32.totalorder %s3625_s8, %s4402_s3 }
  0xac   : > { %p2743_p3 = scmp.ne.s32.totalorder %s3625_s8, %s2742_s18  ;;  %p2748_p0 = scmp.lt.u32.totalorder %s2746_s27, %s2742_s18 }
  0xad   : > { %p2750_p10 = scmp.lt.u32.totalorder %s2742_s18, %s3625_s8 }
  0xae   : > { %p2744_p2 = pnand %p2743_p3, %p4403_p12  ;;  %p2749_p5 = por %p2748_p0, %p2747_p11 }
  0xb0   : > { %p2745_p1 = pneg %p2744_p2  ;;  %p2751_p9 = por %p2750_p10, %p2749_p5 }
  0xb2   : > { %p2752_p6 = pnand %p2751_p9, %p2745_p1 }
  0xb4   : > { %2755 = shalt.err (!%p2752_p6)
}
  0xb5   : > { %s2756_s21 = scalar_lea.vmem %s605_s22, 16  ;;  %s3273_s4 = smov [#allocation10]  }
  0xb6   : > { %p2757_p7 = scmp.ne.s32.totalorder %s605_s22, %s2756_s21  ;;  %s2760_s1 = sshll.u32 %s3273_s4, 4  ;;  %s2761_s1 = int_to_ptr.vmem [resolvable:$false] %s2760_s1 }
  0xb7   : > { %s2762_s20 = scalar_lea.vmem %s2761_s1, 32  ;;  %p2763_p3 = scmp.lt.s32.totalorder %s605_s22, %s2761_s1 }
  0xb8   : > { %p2758_p13 = pnand %p2757_p7, %p4403_p12  ;;  %p2764_p2 = scmp.lt.s32.totalorder %s2762_s20, %s2756_s21 }
  0xba   : > { %p2759_p8 = pneg %p2758_p13  ;;  %p2765_p4 = por %p2764_p2, %p2763_p3 }
  0xbc   : > { %p2766_p0 = pnand %p2765_p4, %p2759_p8 }
  0xbe   : > { %2769 = shalt.err (!%p2766_p0)
}
  0xbf   : > { %s4404_s27 = scalar_lea.sflag [#allocation11], %s3586_s13  ;;  %s4405_s5 = sld [smem:[#allocation62_spill]] }
  0xc0   : > { %2477 = dma.hbm_to_vmem [thread:$0]  (%p4403_p12), %s3625_s8, 16, %s605_s22, %s4404_s27  }
  0xc1   : > { %s635_s1 = scalar_lea.vmem [#allocation13], %s3616_s14 }
  0xc2   : > { %s642_s17 = sshll.u32 %s635_s1, 4  ;;  %s643_s17 = int_to_ptr.vmem [resolvable:$true] %s642_s17 }
  0xc5   : > { %s3652_s4 = scalar_lea.hbm %s4405_s5, %s3619_s15  ;;  %s2774_s22 = scalar_lea.hbm %s4405_s5, 32 }
  0xc6   : > { %s2770_s21 = scalar_lea.hbm %s3652_s4, 16  ;;  %p2775_p5 = scmp.lt.u32.totalorder %s3652_s4, %s4405_s5 }
  0xc7   : > { %p2771_p4 = scmp.ne.s32.totalorder %s3652_s4, %s2770_s21  ;;  %p2776_p10 = scmp.lt.u32.totalorder %s2774_s22, %s2770_s21 }
  0xc8   : > { %p2778_p6 = scmp.lt.u32.totalorder %s2770_s21, %s3652_s4 }
  0xc9   : > { %p2772_p1 = pnand %p2771_p4, %p4403_p12  ;;  %p2777_p9 = por %p2776_p10, %p2775_p5 }
  0xcb   : > { %p2773_p11 = pneg %p2772_p1  ;;  %p2779_p7 = por %p2778_p6, %p2777_p9 }
  0xcd   : > { %p2780_p13 = pnand %p2779_p7, %p2773_p11 }
  0xcf   : > { %2783 = shalt.err (!%p2780_p13)
}
  0xd0   : > { %s2784_s19 = scalar_lea.vmem %s643_s17, 16  ;;  %s3274_s1 = smov [#allocation13]  }
  0xd1   : > { %p2785_p8 = scmp.ne.s32.totalorder %s643_s17, %s2784_s19  ;;  %s2788_s10 = sshll.u32 %s3274_s1, 4  ;;  %s2789_s10 = int_to_ptr.vmem [resolvable:$false] %s2788_s10 }
  0xd2   : > { %s2790_s20 = scalar_lea.vmem %s2789_s10, 32  ;;  %p2791_p0 = scmp.lt.s32.totalorder %s643_s17, %s2789_s10 }
  0xd3   : > { %p2786_p3 = pnand %p2785_p8, %p4403_p12  ;;  %p2792_p4 = scmp.lt.s32.totalorder %s2790_s20, %s2784_s19 }
  0xd5   : > { %p2787_p2 = pneg %p2786_p3  ;;  %p2793_p1 = por %p2792_p4, %p2791_p0 }
  0xd7   : > { %p2794_p5 = pnand %p2793_p1, %p2787_p2 }
  0xd9   : > { %2797 = shalt.err (!%p2794_p5)
}
  0xda   : > { %s4406_s21 = scalar_lea.sflag [#allocation14], %s3586_s13  ;;  %s4407_s7 = sld [smem:[#allocation64_spill]] }
  0xdb   : > { %2479 = dma.hbm_to_vmem [thread:$0]  (%p4403_p12), %s3652_s4, 16, %s643_s17, %s4406_s21  }
  0xdc   : > { %s669_s10 = scalar_lea.vmem [#allocation16], %s3616_s14 }
  0xdd   : > { %s676_s18 = sshll.u32 %s669_s10, 4  ;;  %s677_s18 = int_to_ptr.vmem [resolvable:$true] %s676_s18 }
  0xe0   : > { %s3679_s27 = scalar_lea.hbm %s4407_s7, %s3619_s15  ;;  %s2802_s17 = scalar_lea.hbm %s4407_s7, 32 }
  0xe1   : > { %s2798_s1 = scalar_lea.hbm %s3679_s27, 16  ;;  %p2803_p6 = scmp.lt.u32.totalorder %s3679_s27, %s4407_s7 }
  0xe2   : > { %p2799_p11 = scmp.ne.s32.totalorder %s3679_s27, %s2798_s1  ;;  %p2804_p7 = scmp.lt.u32.totalorder %s2802_s17, %s2798_s1 }
  0xe3   : > { %p2806_p8 = scmp.lt.u32.totalorder %s2798_s1, %s3679_s27 }
  0xe4   : > { %p2800_p10 = pnand %p2799_p11, %p4403_p12  ;;  %p2805_p13 = por %p2804_p7, %p2803_p6 }
  0xe6   : > { %p2801_p9 = pneg %p2800_p10  ;;  %p2807_p3 = por %p2806_p8, %p2805_p13 }
  0xe8   : > { %p2808_p2 = pnand %p2807_p3, %p2801_p9 }
  0xea   : > { %2811 = shalt.err (!%p2808_p2)
}
  0xeb   : > { %s2812_s22 = scalar_lea.vmem %s677_s18, 16  ;;  %s3275_s10 = smov [#allocation16]  }
  0xec   : > { %p2813_p0 = scmp.ne.s32.totalorder %s677_s18, %s2812_s22  ;;  %s2816_s19 = sshll.u32 %s3275_s10, 4  ;;  %s2817_s19 = int_to_ptr.vmem [resolvable:$false] %s2816_s19 }
  0xed   : > { %s2818_s20 = scalar_lea.vmem %s2817_s19, 32  ;;  %p2819_p5 = scmp.lt.s32.totalorder %s677_s18, %s2817_s19 }
  0xee   : > { %p2814_p4 = pnand %p2813_p0, %p4403_p12  ;;  %p2820_p11 = scmp.lt.s32.totalorder %s2818_s20, %s2812_s22 }
  0xf0   : > { %p2815_p1 = pneg %p2814_p4  ;;  %p2821_p10 = por %p2820_p11, %p2819_p5 }
  0xf2   : > { %p2822_p6 = pnand %p2821_p10, %p2815_p1 }
  0xf4   : > { %2825 = shalt.err (!%p2822_p6)
}
  0xf5   : > { %s4408_s1 = scalar_lea.sflag [#allocation17], %s3586_s13  ;;  %s4409_s9 = sld [smem:[#allocation66_spill]] }
  0xf6   : > { %2481 = dma.hbm_to_vmem [thread:$0]  (%p4403_p12), %s3679_s27, 16, %s677_s18, %s4408_s1  }
  0xf7   : > { %s707_s19 = scalar_lea.vmem [#allocation19], %s3616_s14 }
  0xf8   : > { %s714_s8 = sshll.u32 %s707_s19, 4  ;;  %s715_s8 = int_to_ptr.vmem [resolvable:$true] %s714_s8 }
  0xfb   : > { %s3706_s21 = scalar_lea.hbm %s4409_s9, %s3619_s15  ;;  %s2830_s18 = scalar_lea.hbm %s4409_s9, 32 }
  0xfc   : > { %s2826_s10 = scalar_lea.hbm %s3706_s21, 16  ;;  %p2831_p8 = scmp.lt.u32.totalorder %s3706_s21, %s4409_s9 }
  0xfd   : > { %p2827_p9 = scmp.ne.s32.totalorder %s3706_s21, %s2826_s10  ;;  %p2832_p3 = scmp.lt.u32.totalorder %s2830_s18, %s2826_s10 }
  0xfe   : > { %p2834_p0 = scmp.lt.u32.totalorder %s2826_s10, %s3706_s21 }
  0xff   : > { %p2828_p7 = pnand %p2827_p9, %p4403_p12  ;;  %p2833_p2 = por %p2832_p3, %p2831_p8 }
 0x101   : > { %p2829_p13 = pneg %p2828_p7  ;;  %p2835_p4 = por %p2834_p0, %p2833_p2 }
 0x103   : > { %p2836_p1 = pnand %p2835_p4, %p2829_p13 }
 0x105   : > { %2839 = shalt.err (!%p2836_p1)
}
 0x106   : > { %s2840_s17 = scalar_lea.vmem %s715_s8, 16  ;;  %s3276_s19 = smov [#allocation19]  }
 0x107   : > { %p2841_p5 = scmp.ne.s32.totalorder %s715_s8, %s2840_s17  ;;  %s2844_s22 = sshll.u32 %s3276_s19, 4  ;;  %s2845_s22 = int_to_ptr.vmem [resolvable:$false] %s2844_s22 }
 0x108   : > { %s2846_s20 = scalar_lea.vmem %s2845_s22, 32  ;;  %p2847_p6 = scmp.lt.s32.totalorder %s715_s8, %s2845_s22 }
 0x109   : > { %p2842_p11 = pnand %p2841_p5, %p4403_p12  ;;  %p2848_p9 = scmp.lt.s32.totalorder %s2846_s20, %s2840_s17 }
 0x10b   : > { %p2843_p10 = pneg %p2842_p11  ;;  %p2849_p7 = por %p2848_p9, %p2847_p6 }
 0x10d   : > { %p2850_p3 = pnand %p2849_p7, %p2843_p10 }
 0x10f   : > { %2853 = shalt.err (!%p2850_p3)
}
 0x110   : > { %s4410_s10 = scalar_lea.sflag [#allocation20], %s3586_s13  ;;  %s4411_s11 = sld [smem:[#allocation68_spill]] }
 0x111   : > { %2483 = dma.hbm_to_vmem [thread:$0]  (%p4403_p12), %s3706_s21, 16, %s715_s8, %s4410_s10  }
 0x112   : > { %s745_s22 = scalar_lea.vmem [#allocation22], %s3616_s14 }
 0x113   : > { %s752_s4 = sshll.u32 %s745_s22, 4  ;;  %s753_s4 = int_to_ptr.vmem [resolvable:$true] %s752_s4 }
 0x116   : > { %s3733_s1 = scalar_lea.hbm %s4411_s11, %s3619_s15  ;;  %s2858_s8 = scalar_lea.hbm %s4411_s11, 32 }
 0x117   : > { %s2854_s19 = scalar_lea.hbm %s3733_s1, 16  ;;  %p2859_p0 = scmp.lt.u32.totalorder %s3733_s1, %s4411_s11 }
 0x118   : > { %p2855_p13 = scmp.ne.s32.totalorder %s3733_s1, %s2854_s19  ;;  %p2860_p4 = scmp.lt.u32.totalorder %s2858_s8, %s2854_s19 }
 0x119   : > { %p2862_p5 = scmp.lt.u32.totalorder %s2854_s19, %s3733_s1 }
 0x11a   : > { %p2856_p8 = pnand %p2855_p13, %p4403_p12  ;;  %p2861_p1 = por %p2860_p4, %p2859_p0 }
 0x11c   : > { %p2857_p2 = pneg %p2856_p8  ;;  %p2863_p11 = por %p2862_p5, %p2861_p1 }
 0x11e   : > { %p2864_p10 = pnand %p2863_p11, %p2857_p2 }
 0x120   : > { %2867 = shalt.err (!%p2864_p10)
}
 0x121   : > { %s2868_s18 = scalar_lea.vmem %s753_s4, 16  ;;  %s3277_s22 = smov [#allocation22]  }
 0x122   : > { %p2869_p6 = scmp.ne.s32.totalorder %s753_s4, %s2868_s18  ;;  %s2872_s17 = sshll.u32 %s3277_s22, 4  ;;  %s2873_s17 = int_to_ptr.vmem [resolvable:$false] %s2872_s17 }
 0x123   : > { %s2874_s20 = scalar_lea.vmem %s2873_s17, 32  ;;  %p2875_p3 = scmp.lt.s32.totalorder %s753_s4, %s2873_s17 }
 0x124   : > { %p2870_p9 = pnand %p2869_p6, %p4403_p12  ;;  %p2876_p13 = scmp.lt.s32.totalorder %s2874_s20, %s2868_s18 }
 0x126   : > { %p2871_p7 = pneg %p2870_p9  ;;  %p2877_p8 = por %p2876_p13, %p2875_p3 }
 0x128   : > { %p2878_p0 = pnand %p2877_p8, %p2871_p7 }
 0x12a   : > { %2881 = shalt.err (!%p2878_p0)
}
 0x12b   : > { %s4412_s19 = scalar_lea.sflag [#allocation23], %s3586_s13  ;;  %s2275_s21 = sshll.u32 %s3583_s24, 3 }
 0x12c   : > { %2485 = dma.hbm_to_vmem [thread:$0]  (%p4403_p12), %s3733_s1, 16, %s753_s4, %s4412_s19  }
 0x12d   : > { %s2276_s8 = sshll.u32 %s3264_s30, 7  ;;  %s4413_s17 = sld [smem:[#allocation57_spill]] }
 0x12e   : > { %s542_s22 = scalar_lea.vmem [#allocation4], %s2275_s21  ;;  %s3764_s3 = sshll.u32 %s3616_s14, 4 }
 0x12f   : > { %s549_s20 = sshll.u32 %s542_s22, 4  ;;  %s539_s5 = scalar_lea.sflag [#allocation5], %s3583_s24  ;;  %s550_s20 = int_to_ptr.vmem [resolvable:$true] %s549_s20 }
 0x130   : > { %p4414_p4 = scmp.ne.s32.totalorder %s4382_s28, 0 }
 0x133   : > { %s3761_s18 = scalar_lea.hbm %s4413_s17, %s2276_s8  ;;  %s2886_s19 = scalar_lea.hbm %s4413_s17, 256 }
 0x134   : > { %s2882_s7 = scalar_lea.hbm %s3761_s18, 128  ;;  %p2887_p11 = scmp.lt.u32.totalorder %s3761_s18, %s4413_s17 }
 0x135   : > { %p2883_p2 = scmp.ne.s32.totalorder %s3761_s18, %s2882_s7  ;;  %p2888_p10 = scmp.lt.u32.totalorder %s2886_s19, %s2882_s7 }
 0x136   : > { %p2890_p9 = scmp.lt.u32.totalorder %s2882_s7, %s3761_s18 }
 0x137   : > { %p2884_p1 = pnand %p2883_p2, %p4414_p4  ;;  %p2889_p6 = por %p2888_p10, %p2887_p11 }
 0x139   : > { %p2885_p5 = pneg %p2884_p1  ;;  %p2891_p7 = por %p2890_p9, %p2889_p6 }
 0x13b   : > { %p2892_p3 = pnand %p2891_p7, %p2885_p5 }
 0x13d   : > { %2895 = shalt.err (!%p2892_p3)
}
 0x13e   : > { %s2896_s24 = scalar_lea.vmem %s550_s20, 128  ;;  %s3278_s21 = smov [#allocation4]  }
 0x13f   : > { %p2897_p13 = scmp.ne.s32.totalorder %s550_s20, %s2896_s24  ;;  %s2900_s27 = sshll.u32 %s3278_s21, 4  ;;  %s2901_s27 = int_to_ptr.vmem [resolvable:$false] %s2900_s27 }
 0x140   : > { %s2902_s22 = scalar_lea.vmem %s2901_s27, 256  ;;  %p2903_p2 = scmp.lt.s32.totalorder %s550_s20, %s2901_s27 }
 0x141   : > { %p2898_p8 = pnand %p2897_p13, %p4414_p4  ;;  %p2904_p1 = scmp.lt.s32.totalorder %s2902_s22, %s2896_s24 }
 0x143   : > { %p2899_p0 = pneg %p2898_p8  ;;  %p2905_p12 = por %p2904_p1, %p2903_p2 }
 0x145   : > { %p2906_p10 = pnand %p2905_p12, %p2899_p0 }
 0x147   : > { %2909 = shalt.err (!%p2906_p10)
}
 0x148   : > { %2474 = dma.hbm_to_vmem [thread:$0]  (%p4414_p4), %s3761_s18, 128, %s550_s20, %s539_s5  }
 0x149   : > { %s3785_s7 = sshll.u32 %s3260_s29, 8  ;;  %s577_s1 = scalar_lea.vmem [#allocation9], %s3764_s3 }
 0x14a   : > { %s584_s4 = sshll.u32 %s577_s1, 4  ;;  %s4415_s2 = sld [smem:[#allocation59_spill]]  ;;  %s3794_s4 = int_to_ptr.vmem [resolvable:$true] %s584_s4 }
 0x14b   : > { %p4416_p5 = scmp.ne.s32.totalorder %s4387_s6, 0 }
 0x150   : > { %s3792_s10 = scalar_lea.hbm %s4415_s2, %s3785_s7  ;;  %s2914_s20 = scalar_lea.hbm %s4415_s2, 512 }
 0x151   : > { %s2910_s28 = scalar_lea.hbm %s3792_s10, 256  ;;  %p2915_p6 = scmp.lt.u32.totalorder %s3792_s10, %s4415_s2 }
 0x152   : > { %p2911_p12 = scmp.ne.s32.totalorder %s3792_s10, %s2910_s28  ;;  %p2916_p9 = scmp.lt.u32.totalorder %s2914_s20, %s2910_s28 }
 0x153   : > { %p2918_p3 = scmp.lt.u32.totalorder %s2910_s28, %s3792_s10 }
 0x154   : > { %p2912_p4 = pnand %p2911_p12, %p4416_p5  ;;  %p2917_p7 = por %p2916_p9, %p2915_p6 }
 0x156   : > { %p2913_p11 = pneg %p2912_p4  ;;  %p2919_p13 = por %p2918_p3, %p2917_p7 }
 0x158   : > { %p2920_p8 = pnand %p2919_p13, %p2913_p11 }
 0x15a   : > { %2923 = shalt.err (!%p2920_p8)
}
 0x15b   : > { %s2924_s27 = scalar_lea.vmem %s3794_s4, 256  ;;  %s3279_s22 = smov [#allocation9]  }
 0x15c   : > { %p2925_p0 = scmp.ne.s32.totalorder %s3794_s4, %s2924_s27  ;;  %s2928_s1 = sshll.u32 %s3279_s22, 4  ;;  %s2929_s1 = int_to_ptr.vmem [resolvable:$false] %s2928_s1 }
 0x15d   : > { %s2930_s19 = scalar_lea.vmem %s2929_s1, 512  ;;  %p2931_p10 = scmp.lt.s32.totalorder %s3794_s4, %s2929_s1 }
 0x15e   : > { %p2926_p2 = pnand %p2925_p0, %p4416_p5  ;;  %p2932_p12 = scmp.lt.s32.totalorder %s2930_s19, %s2924_s27 }
 0x160   : > { %p2927_p1 = pneg %p2926_p2  ;;  %p2933_p4 = por %p2932_p12, %p2931_p10 }
 0x162   : > { %p2934_p6 = pnand %p2933_p4, %p2927_p1 }
 0x164   : > { %2937 = shalt.err (!%p2934_p6)
}
 0x165   : > { %s3280_s8 = smov 64   ;;  %s3281_s28 = smov 4  }
 0x166   : > { %s4417_s5 = scalar_lea.sflag [#allocation8], %s3586_s13  ;;  %s4418_s24 = sld [smem:[#allocation61_spill]] }
 0x167   : > { %2476 = dma.hbm_to_vmem [thread:$0]  (%p4416_p5), %s3792_s10, 256, %s3794_s4, %s4417_s5, %s3280_s8, %s3280_s8, %s3281_s28  }
 0x168   : > { %s615_s27 = scalar_lea.vmem [#allocation12], %s3764_s3  ;;  %s4420_s9 = sld [smem:[#allocation63_spill]] }
 0x169   : > { %s622_s22 = sshll.u32 %s615_s27, 4  ;;  %s3829_s22 = int_to_ptr.vmem [resolvable:$true] %s622_s22 }
 0x16c   : > { %s4419_s1 = smov %s4418_s24  ;;  %s3826_s21 = scalar_lea.hbm %s4418_s24, %s3785_s7 }
 0x16d   : > { %s2938_s17 = scalar_lea.hbm %s3826_s21, 256  ;;  %s2942_s5 = scalar_lea.hbm %s4419_s1, 512 }
 0x16e   : > { %s3835_s11 = scalar_lea.hbm %s4420_s9, %s3619_s15  ;;  %p2939_p11 = scmp.ne.s32.totalorder %s3826_s21, %s2938_s17 }
 0x16f   : > { %p2943_p3 = scmp.lt.u32.totalorder %s3826_s21, %s4419_s1  ;;  %p2944_p13 = scmp.lt.u32.totalorder %s2942_s5, %s2938_s17 }
 0x170   : > { %p2940_p9 = pnand %p2939_p11, %p4416_p5  ;;  %p2946_p0 = scmp.lt.u32.totalorder %s2938_s17, %s3826_s21 }
 0x171   : > { %p2945_p8 = por %p2944_p13, %p2943_p3 }
 0x172   : > { %p2941_p7 = pneg %p2940_p9 }
 0x173   : > { %p2947_p2 = por %p2946_p0, %p2945_p8 }
 0x175   : > { %p2948_p1 = pnand %p2947_p2, %p2941_p7 }
 0x177   : > { %2951 = shalt.err (!%p2948_p1)
}
 0x178   : > { %s2952_s2 = scalar_lea.vmem %s3829_s22, 256  ;;  %s3282_s24 = smov [#allocation12]  }
 0x179   : > { %p2953_p10 = scmp.ne.s32.totalorder %s3829_s22, %s2952_s2  ;;  %s2956_s27 = sshll.u32 %s3282_s24, 4  ;;  %s2957_s27 = int_to_ptr.vmem [resolvable:$false] %s2956_s27 }
 0x17a   : > { %s2958_s19 = scalar_lea.vmem %s2957_s27, 512  ;;  %p2959_p6 = scmp.lt.s32.totalorder %s3829_s22, %s2957_s27 }
 0x17b   : > { %p2954_p12 = pnand %p2953_p10, %p4416_p5  ;;  %p2960_p11 = scmp.lt.s32.totalorder %s2958_s19, %s2952_s2 }
 0x17d   : > { %p2955_p4 = pneg %p2954_p12  ;;  %p2961_p9 = por %p2960_p11, %p2959_p6 }
 0x17f   : > { %p2962_p3 = pnand %p2961_p9, %p2955_p4 }
 0x181   : > { %2965 = shalt.err (!%p2962_p3)
}
 0x182   : > { %s4421_s17 = scalar_lea.sflag [#allocation11], %s3586_s13  ;;  %s652_s4 = scalar_lea.vmem [#allocation15], %s3616_s14 }
 0x183   : > { %2478 = dma.hbm_to_vmem [thread:$0]  (%p4416_p5), %s3826_s21, 256, %s3829_s22, %s4421_s17, %s3280_s8, %s3280_s8, %s3281_s28  }
 0x184   : > { %s659_s10 = sshll.u32 %s652_s4, 4  ;;  %s4422_s20 = sld [smem:[#allocation65_spill]]  ;;  %s660_s10 = int_to_ptr.vmem [resolvable:$true] %s659_s10 }
 0x185   : > { %s2966_s24 = scalar_lea.hbm %s3835_s11, 16  ;;  %s2970_s1 = scalar_lea.hbm %s4420_s9, 32 }
 0x186   : > { %p2967_p7 = scmp.ne.s32.totalorder %s3835_s11, %s2966_s24  ;;  %p2971_p0 = scmp.lt.u32.totalorder %s3835_s11, %s4420_s9 }
 0x187   : > { %p2972_p2 = scmp.lt.u32.totalorder %s2970_s1, %s2966_s24  ;;  %p2974_p10 = scmp.lt.u32.totalorder %s2966_s24, %s3835_s11 }
 0x188   : > { %p2968_p13 = pnand %p2967_p7, %p4416_p5 }
 0x189   : > { %p2973_p1 = por %p2972_p2, %p2971_p0 }
 0x18a   : > { %s3868_s2 = scalar_lea.hbm %s4422_s20, %s3785_s7  ;;  %p2969_p8 = pneg %p2968_p13 }
 0x18b   : > { %p2975_p12 = por %p2974_p10, %p2973_p1 }
 0x18d   : > { %p2976_p4 = pnand %p2975_p12, %p2969_p8 }
 0x18f   : > { %2979 = shalt.err (!%p2976_p4)
}
 0x190   : > { %s2980_s7 = scalar_lea.vmem %s660_s10, 16  ;;  %s3283_s21 = smov [#allocation15]  }
 0x191   : > { %p2981_p6 = scmp.ne.s32.totalorder %s660_s10, %s2980_s7  ;;  %s2984_s22 = sshll.u32 %s3283_s21, 4  ;;  %s2985_s22 = int_to_ptr.vmem [resolvable:$false] %s2984_s22 }
 0x192   : > { %s2986_s17 = scalar_lea.vmem %s2985_s22, 32  ;;  %p2987_p3 = scmp.lt.s32.totalorder %s660_s10, %s2985_s22 }
 0x193   : > { %p2982_p11 = pnand %p2981_p6, %p4416_p5  ;;  %p2988_p7 = scmp.lt.s32.totalorder %s2986_s17, %s2980_s7 }
 0x195   : > { %p2983_p9 = pneg %p2982_p11  ;;  %p2989_p13 = por %p2988_p7, %p2987_p3 }
 0x197   : > { %p2990_p0 = pnand %p2989_p13, %p2983_p9 }
 0x199   : > { %2993 = shalt.err (!%p2990_p0)
}
 0x19a   : > { %s4423_s26 = scalar_lea.sflag [#allocation14], %s3586_s13  ;;  %s687_s30 = scalar_lea.vmem [#allocation18], %s3764_s3 }
 0x19b   : > { %2480 = dma.hbm_to_vmem [thread:$0]  (%p4416_p5), %s3835_s11, 16, %s660_s10, %s4423_s26  }
 0x19c   : > { %s694_s1 = sshll.u32 %s687_s30, 4  ;;  %s2292_s4 = sshll.u32 %s3616_s14, 5  ;;  %s3891_s1 = int_to_ptr.vmem [resolvable:$true] %s694_s1 }
 0x19d   : > { %s2994_s5 = scalar_lea.hbm %s3868_s2, 256  ;;  %s2998_s27 = scalar_lea.hbm %s4422_s20, 512 }
 0x19e   : > { %p2995_p8 = scmp.ne.s32.totalorder %s3868_s2, %s2994_s5  ;;  %p2999_p10 = scmp.lt.u32.totalorder %s3868_s2, %s4422_s20 }
 0x19f   : > { %p3000_p12 = scmp.lt.u32.totalorder %s2998_s27, %s2994_s5  ;;  %p3002_p6 = scmp.lt.u32.totalorder %s2994_s5, %s3868_s2 }
 0x1a0   : > { %p2996_p2 = pnand %p2995_p8, %p4416_p5 }
 0x1a1   : > { %p3001_p4 = por %p3000_p12, %p2999_p10 }
 0x1a2   : > { %p2997_p1 = pneg %p2996_p2 }
 0x1a3   : > { %p3003_p11 = por %p3002_p6, %p3001_p4 }
 0x1a5   : > { %p3004_p9 = pnand %p3003_p11, %p2997_p1 }
 0x1a7   : > { %3007 = shalt.err (!%p3004_p9)
}
 0x1a8   : > { %s3008_s3 = scalar_lea.vmem %s3891_s1, 256  ;;  %s3284_s11 = smov [#allocation18]  }
 0x1a9   : > { %p3009_p3 = scmp.ne.s32.totalorder %s3891_s1, %s3008_s3  ;;  %s3012_s10 = sshll.u32 %s3284_s11, 4  ;;  %s3013_s10 = int_to_ptr.vmem [resolvable:$false] %s3012_s10 }
 0x1aa   : > { %s3014_s21 = scalar_lea.vmem %s3013_s10, 512  ;;  %p3015_p0 = scmp.lt.s32.totalorder %s3891_s1, %s3013_s10 }
 0x1ab   : > { %p3010_p7 = pnand %p3009_p3, %p4416_p5  ;;  %p3016_p8 = scmp.lt.s32.totalorder %s3014_s21, %s3008_s3 }
 0x1ad   : > { %p3011_p13 = pneg %p3010_p7  ;;  %p3017_p2 = por %p3016_p8, %p3015_p0 }
 0x1af   : > { %p3018_p10 = pnand %p3017_p2, %p3011_p13 }
 0x1b1   : > { %3021 = shalt.err (!%p3018_p10)
}
 0x1b2   : > { %s4424_s22 = scalar_lea.sflag [#allocation17], %s3586_s13  ;;  %s2352_s17 = sshll.u32 %s3260_s29, 9 }
 0x1b3   : > { %2482 = dma.hbm_to_vmem [thread:$0]  (%p4416_p5), %s3868_s2, 256, %s3891_s1, %s4424_s22, %s3280_s8, %s3280_s8, %s3281_s28  }
 0x1b4   : > { %s725_s26 = scalar_lea.vmem [#allocation21], %s2292_s4  ;;  %s4425_s24 = sld [smem:[#allocation67_spill]] }
 0x1b5   : > { %s732_s30 = sshll.u32 %s725_s26, 4  ;;  %s3927_s30 = int_to_ptr.vmem [resolvable:$true] %s732_s30 }
 0x1ba   : > { %s4426_s19 = smov %s4425_s24  ;;  %s3925_s27 = scalar_lea.hbm %s4425_s24, %s2352_s17 }
 0x1bb   : > { %s3022_s7 = scalar_lea.hbm %s3925_s27, 512  ;;  %s3026_s4 = scalar_lea.hbm %s4426_s19, 1024 }
 0x1bc   : > { %p3023_p1 = scmp.ne.s32.totalorder %s3925_s27, %s3022_s7  ;;  %p3027_p6 = scmp.lt.u32.totalorder %s3925_s27, %s4426_s19 }
 0x1bd   : > { %p3028_p11 = scmp.lt.u32.totalorder %s3026_s4, %s3022_s7  ;;  %p3030_p3 = scmp.lt.u32.totalorder %s3022_s7, %s3925_s27 }
 0x1be   : > { %p3024_p12 = pnand %p3023_p1, %p4416_p5 }
 0x1bf   : > { %p3029_p9 = por %p3028_p11, %p3027_p6 }
 0x1c0   : > { %p3025_p4 = pneg %p3024_p12 }
 0x1c1   : > { %p3031_p7 = por %p3030_p3, %p3029_p9 }
 0x1c3   : > { %p3032_p13 = pnand %p3031_p7, %p3025_p4 }
 0x1c5   : > { %3035 = shalt.err (!%p3032_p13)
}
 0x1c6   : > { %s3036_s10 = scalar_lea.vmem %s3927_s30, 512  ;;  %s3285_s21 = smov [#allocation21]  }
 0x1c7   : > { %p3037_p0 = scmp.ne.s32.totalorder %s3927_s30, %s3036_s10  ;;  %s3040_s22 = sshll.u32 %s3285_s21, 4  ;;  %s3041_s22 = int_to_ptr.vmem [resolvable:$false] %s3040_s22 }
 0x1c8   : > { %s3042_s17 = scalar_lea.vmem %s3041_s22, 1024  ;;  %p3043_p10 = scmp.lt.s32.totalorder %s3927_s30, %s3041_s22 }
 0x1c9   : > { %p3038_p8 = pnand %p3037_p0, %p4416_p5  ;;  %p3044_p1 = scmp.lt.s32.totalorder %s3042_s17, %s3036_s10 }
 0x1cb   : > { %p3039_p2 = pneg %p3038_p8  ;;  %p3045_p12 = por %p3044_p1, %p3043_p10 }
 0x1cd   : > { %p3046_p6 = pnand %p3045_p12, %p3039_p2 }
 0x1cf   : > { %3049 = shalt.err (!%p3046_p6)
}
 0x1d0   : > { %s4427_s26 = scalar_lea.sflag [#allocation20], %s3586_s13  ;;  %s4428_s24 = sld [smem:[#allocation69_spill]] }
 0x1d1   : > { %2484 = dma.hbm_to_vmem [thread:$0]  (%p4416_p5), %s3925_s27, 512, %s3927_s30, %s4427_s26, %s3280_s8, %s3280_s8, %s3281_s28  }
 0x1d2   : > { %s762_s1 = scalar_lea.vmem [#allocation24], %s3616_s14 }
 0x1d3   : > { %s769_s4 = sshll.u32 %s762_s1, 4  ;;  %s770_s4 = int_to_ptr.vmem [resolvable:$true] %s769_s4 }
 0x1d6   : > { %s4429_s7 = smov %s4428_s24  ;;  %s3959_s2 = scalar_lea.hbm %s4428_s24, %s3619_s15 }
 0x1d7   : > { %s3050_s3 = scalar_lea.hbm %s3959_s2, 16  ;;  %s3054_s8 = scalar_lea.hbm %s4429_s7, 32 }
 0x1d8   : > { %p3051_p4 = scmp.ne.s32.totalorder %s3959_s2, %s3050_s3  ;;  %p3055_p3 = scmp.lt.u32.totalorder %s3959_s2, %s4429_s7 }
 0x1d9   : > { %p3056_p7 = scmp.lt.u32.totalorder %s3054_s8, %s3050_s3  ;;  %p3058_p0 = scmp.lt.u32.totalorder %s3050_s3, %s3959_s2 }
 0x1da   : > { %p3052_p11 = pnand %p3051_p4, %p4416_p5 }
 0x1db   : > { %p3057_p13 = por %p3056_p7, %p3055_p3 }
 0x1dc   : > { %p3053_p9 = pneg %p3052_p11 }
 0x1dd   : > { %p3059_p8 = por %p3058_p0, %p3057_p13 }
 0x1df   : > { %p3060_p2 = pnand %p3059_p8, %p3053_p9 }
 0x1e1   : > { %3063 = shalt.err (!%p3060_p2)
}
 0x1e2   : > { %s3064_s27 = scalar_lea.vmem %s770_s4, 16  ;;  %s3286_s21 = smov [#allocation24]  }
 0x1e3   : > { %p3065_p10 = scmp.ne.s32.totalorder %s770_s4, %s3064_s27  ;;  %s3068_s22 = sshll.u32 %s3286_s21, 4  ;;  %s3069_s22 = int_to_ptr.vmem [resolvable:$false] %s3068_s22 }
 0x1e4   : > { %s3070_s17 = scalar_lea.vmem %s3069_s22, 32  ;;  %p3071_p6 = scmp.lt.s32.totalorder %s770_s4, %s3069_s22 }
 0x1e5   : > { %p3066_p1 = pnand %p3065_p10, %p4416_p5  ;;  %p3072_p4 = scmp.lt.s32.totalorder %s3070_s17, %s3064_s27 }
 0x1e7   : > { %p3067_p12 = pneg %p3066_p1  ;;  %p3073_p11 = por %p3072_p4, %p3071_p6 }
 0x1e9   : > { %p3074_p3 = pnand %p3073_p11, %p3067_p12 }
 0x1eb   : > { %3077 = shalt.err (!%p3074_p3)
}
 0x1ec   : > { %s4430_s26 = scalar_lea.sflag [#allocation23], %s3586_s13  ;;  %s4431_s24 = sld [smem:[#allocation70_spill]] }
 0x1ed   : > { %2486 = dma.hbm_to_vmem [thread:$0]  (%p4416_p5), %s3959_s2, 16, %s770_s4, %s4430_s26  }
 0x1ee   : > { %s779_s11 = scalar_lea.vmem [#allocation25], %s3616_s14  ;;  %s777_s8 = scalar_lea.sflag [#allocation26], %s3586_s13 }
 0x1ef   : > { %s786_s10 = sshll.u32 %s779_s11, 4  ;;  %s787_s10 = int_to_ptr.vmem [resolvable:$true] %s786_s10 }
 0x1f2   : > { %s4432_s1 = smov %s4431_s24  ;;  %s3985_s3 = scalar_lea.hbm %s4431_s24, %s3619_s15 }
 0x1f3   : > { %s3078_s28 = scalar_lea.hbm %s3985_s3, 16  ;;  %s3082_s4 = scalar_lea.hbm %s4432_s1, 32 }
 0x1f4   : > { %p3079_p9 = scmp.ne.s32.totalorder %s3985_s3, %s3078_s28  ;;  %p3083_p0 = scmp.lt.u32.totalorder %s3985_s3, %s4432_s1 }
 0x1f5   : > { %p3084_p8 = scmp.lt.u32.totalorder %s3082_s4, %s3078_s28  ;;  %p3086_p10 = scmp.lt.u32.totalorder %s3078_s28, %s3985_s3 }
 0x1f6   : > { %p3080_p7 = pnand %p3079_p9, %p4416_p5 }
 0x1f7   : > { %p3085_p2 = por %p3084_p8, %p3083_p0 }
 0x1f8   : > { %p3081_p13 = pneg %p3080_p7 }
 0x1f9   : > { %p3087_p1 = por %p3086_p10, %p3085_p2 }
 0x1fb   : > { %p3088_p12 = pnand %p3087_p1, %p3081_p13 }
 0x1fd   : > { %3091 = shalt.err (!%p3088_p12)
}
 0x1fe   : > { %s3092_s13 = scalar_lea.vmem %s787_s10, 16  ;;  %s3287_s14 = smov [#allocation25]  }
 0x1ff   : > { %p3093_p6 = scmp.ne.s32.totalorder %s787_s10, %s3092_s13  ;;  %s3096_s21 = sshll.u32 %s3287_s14, 4  ;;  %s3097_s21 = int_to_ptr.vmem [resolvable:$false] %s3096_s21 }
 0x200   : > { %s3098_s22 = scalar_lea.vmem %s3097_s21, 32  ;;  %p3099_p3 = scmp.lt.s32.totalorder %s787_s10, %s3097_s21 }
 0x201   : > { %p3094_p4 = pnand %p3093_p6, %p4416_p5  ;;  %p3100_p9 = scmp.lt.s32.totalorder %s3098_s22, %s3092_s13 }
 0x203   : > { %p3095_p11 = pneg %p3094_p4  ;;  %p3101_p7 = por %p3100_p9, %p3099_p3 }
 0x205   : > { %p3102_p0 = pnand %p3101_p7, %p3095_p11 }
 0x207   : > { %3105 = shalt.err (!%p3102_p0)
}
 0x208   : > { %2487 = dma.hbm_to_vmem [thread:$0]  (%p4416_p5), %s3985_s3, 16, %s787_s10, %s777_s8  }
 0x209 PF: > { %p4433_p13 = scmp.ne.s32.totalorder %s4396_s16, 0 }
 0x20a   : > { %s4009_s17 = sand.u32 (!%p4433_p13), 1, %s3244_s25   ;;  %p4434_p8 = scmp.ne.s32.totalorder (!%p4433_p13), %s4384_s12, 0 }
 0x20b   : > { %795 = sbr.rel (%p4433_p13) target bundleno = 3545 (0xdd9), region = 84  ;;  %s2299_s26 = sshll.u32 (!%p4433_p13), %s4009_s17, 3 }
 0x20c   : > { %s798_s5 = scalar_lea.sflag (!%p4433_p13), [#allocation5], %s4009_s17  ;;  %s4015_s18 = scalar_lea.vmem (!%p4433_p13), [#allocation4], %s2299_s26 }
 0x212   : > { %3179 = dma.done.wait (%p4434_p8), %s798_s5, 128  }
 0x213   : > { %3181 = vsyncadd (%p4434_p8), %s798_s5, 4294967168  ;;  %s4435_s6 = sld [smem:[#allocation49_spill]]  ;;  %s809_s3 = scalar_lea.vmem [#allocation7], %s4009_s17 }
 0x219   : > { %s4022_s16 = sand.u32 1, %s4435_s6  }
 0x21a   : > { %s807_s24 = scalar_lea.sflag [#allocation8], %s4022_s16 }
 0x21b   : > { %3183 = dma.done.wait (%p4434_p8), %s807_s24, 16  }
 0x21c   : > { %3185 = vsyncadd (%p4434_p8), %s807_s24, 4294967280  ;;  %s4436_s11 = sld [smem:[#allocation43_spill]]  ;;  %s4437_s10 = sld [smem:[#allocation54_spill]] }
 0x222   : > { %s4031_s8 = sand.u32 1, %s4436_s11   ;;  %p4438_p5 = scmp.ne.s32.totalorder %s4437_s10, 0 }
 0x223   : > { %s4034_s28 = sshll.u32 %s4031_s8, 4 }
 0x224   : > { %s818_s30 = scalar_lea.vmem [#allocation9], %s4034_s28 }
 0x225   : > { %3187 = dma.done.wait (%p4438_p5), %s807_s24, 256  }
 0x226   : > { %3189 = vsyncadd (%p4438_p5), %s807_s24, 4294967040  ;;  %s824_s2 = scalar_lea.sflag [#allocation11], %s4022_s16  ;;  %s826_s12 = scalar_lea.vmem [#allocation10], %s4031_s8 }
 0x227   : > { %3191 = dma.done.wait (%p4438_p5), %s824_s2, 272  }
 0x228   : > { %3193 = vsyncadd (%p4438_p5), %s824_s2, 4294967024  ;;  %s835_s4 = scalar_lea.vmem [#allocation12], %s4034_s28  ;;  %s841_s27 = scalar_lea.sflag [#allocation14], %s4022_s16 }
 0x229   : > { %s843_s15 = scalar_lea.vmem [#allocation13], %s4031_s8 }
 0x22a   : > { %3195 = dma.done.wait (%p4438_p5), %s841_s27, 32  }
 0x22b   : > { %3197 = vsyncadd (%p4438_p5), %s841_s27, 4294967264  ;;  %s851_s13 = scalar_lea.vmem [#allocation15], %s4031_s8  ;;  %s857_s14 = scalar_lea.sflag [#allocation17], %s4022_s16 }
 0x22c   : > { %3199 = dma.done.wait (%p4438_p5), %s857_s14, 272  }
 0x22d   : > { %3201 = vsyncadd (%p4438_p5), %s857_s14, 4294967024  ;;  %s868_s22 = scalar_lea.vmem [#allocation18], %s4034_s28  ;;  %s874_s5 = scalar_lea.sflag [#allocation20], %s4022_s16 }
 0x22e   : > { %3203 = dma.done.wait (%p4438_p5), %s874_s5, 528  }
 0x22f   : > { %3205 = vsyncadd (%p4438_p5), %s874_s5, 4294966768  ;;  %s2303_s11 = sshll.u32 %s4031_s8, 5  ;;  %s891_s27 = scalar_lea.sflag [#allocation23], %s4022_s16 }
 0x230   : > { %s4069_s2 = scalar_lea.vmem [#allocation21], %s2303_s11  ;;  %s893_s14 = scalar_lea.vmem [#allocation22], %s4031_s8 }
 0x231   : > { %3207 = dma.done.wait (%p4438_p5), %s891_s27, 32  }
 0x232   : > { %3209 = vsyncadd (%p4438_p5), %s891_s27, 4294967264  ;;  %s901_s24 = scalar_lea.vmem [#allocation24], %s4031_s8  ;;  %s907_s5 = scalar_lea.sflag [#allocation26], %s4022_s16 }
 0x233   : > { %s909_s21 = scalar_lea.vmem [#allocation25], %s4031_s8 }
 0x234   : > { %3211 = dma.done.wait (%p4438_p5), %s907_s5, 16  }
 0x235   : > { %3213 = vsyncadd (%p4438_p5), %s907_s5, 4294967280  ;;  %p4439_p2 = scmp.eq.s32.totalorder %s4435_s6, 0 }
 0x237   : > { %3215 = dma.done.wait (%p4439_p2), [#allocation26], 16   ;;  %p4440_p10 = pmov %p4439_p2 }
 0x238   : > { %p4441_p1 = pmov %p4439_p2 }
 0x239   : > { %3217 = vsyncadd (%p4440_p10), [#allocation26], 4294967280 }
 0x23a   : > { %3219 = dma.done.wait (%p4441_p1), [#allocation29], 16   ;;  %p4442_p12 = pmov %p4441_p1 }
 0x23b   : > { %s4094_s16 = scalar_lea.vmem [#allocation30], %s2299_s26  ;;  %s4443_s11 = sld [smem:[#allocation46_spill]] }
 0x23c   : > { %3221 = vsyncadd (%p4442_p12), [#allocation29], 4294967280 }
 0x241   : > { %p2307_p6 = scmp.ne.s32.totalorder %s4443_s11, 0 }
 0x242   : > { %v1027_v0 = vld [vmem:[%s4015_s18] sm:$0xff] (!%p2307_p6)  ;;  %vm1028_vm0 = vcmask (!%p2307_p6), 261120  }
 0x243   : > { %1026 = sbr.rel (%p2307_p6) target bundleno = 586 (0x24a), region = 152  ;;  %1029 = vst.msk [vmem:[#allocation2] sm:$0xff] (!%p2307_p6), %vm1028_vm0, %v1027_v0 }
 0x24a PF: > { %v2626_v1 = vld [vmem:[%s818_s30] sm:$0xff]   ;;  %v3288_v2 = vmov 0.0   ;;  %v2627_v3 = vld [vmem:[%s818_s30 + $0x8] sm:$0xff]   ;;  %vm3289_vm1 = vmmov 0   ;;  %vm1056_vm2 = vcmask 261120   ;;  %s3290_s26 = smov 104  }
 0x24b   : > { %2386 = vmatprep.subr.bf16.mxu0 %v3288_v2  ;;  %2394 = vmatprep.subr.bf16.mxu1 %v3288_v2  ;;  %v4106_v4 = vld [vmem:[#allocation2] sm:$0xff]  ;;  %s3291_s18 = smov 120   ;;  %s3292_s6 = smov 96   ;;  %vm1110_vm3 = vcmask 64512   ;;  %vm1368_vm4 = vcmask 1043456   ;;  %vm1557_vm5 = vcmask 60416  }
 0x24c   : > { %2387 = vmatpush3.bf16.msra.mxu0 %v2626_v1  ;;  %2390 = vmatprep.mubr.msk.bf16.mxu0 %vm3289_vm1, %v3288_v2  ;;  %v1032_v5 = vpack.c.bf16 %v4106_v4, %v4106_v4  ;;  %v2308_v6 = vld [vmem:[%s826_s12] ss:$0 sm:$0xff]  ;;  %s3293_s10 = smov 112   ;;  %s3295_s30 = smov 8   ;;  %vm1566_vm6 = vcmask 126016   ;;  %vm1575_vm7 = vcmask 191616  }
 0x24d   : > { %2388 = vmatprep.subr.bf16.mxu0 %v3288_v2  ;;  %2396 = vmatprep.mubr.msk.bf16.mxu1 %vm3289_vm1, %v3288_v2  ;;  %v2316_v25 = vld [vmem:[%s809_s3] ss:$0 sm:$0xff]  ;;  %s3294_s3 = smov 64   ;;  %s3296_s12 = smov 16   ;;  %vm1584_vm8 = vcmask 257216   ;;  %vm1792_vm9 = vcmask 523264  }
 0x24e   : > { %s4444_s28 = scalar_lea.vmem [#allocation16], %s4031_s8 }
 0x250   : > { %2389 = vmatpush3.bf16.msra.mxu0 %v2627_v3 }
 0x251   : > { %2400 = vmatprep.subr.bf16.mxu0 %v3288_v2 }
 0x253   : > { %2391 = vmatmul.mubr.msk.bf16.vlgmr.msra.gmra.mrb[0].mxu0 %vm1056_vm2, %v1032_v5 }
 0x254   : > { %2402 = vmatprep.mubr.msk.bf16.mxu0 %vm3289_vm1, %v3288_v2 }
 0x326   : > { %v1094_v7 = vpop.f32.mrb[0].mxu0 }
 0x327   : > { %v1095_v8 = vadd.f32 %v2308_v6, %v1094_v7  ;;  %v2392_v9 = vpop.f32.mrb[1].mxu0 }
 0x328   : > { %v1097_v10 = vpop.f32.mrb[2].mxu0 }
 0x329   : > { %v4119_v11 = vpack.c.bf16 %v1095_v8, %v1095_v8  ;;  %v2393_v12 = vpop.f32.mrb[3].mxu0 }
 0x32b   : > { %1106 = vrot.lane.b32.xlu1 %v4119_v11, %s3290_s26  ;;  %1102 = vrot.lane.b32.xlu0 %v4119_v11, %s3291_s18 }
 0x32f   : > { %1108 = vrot.lane.b32.xlu1 %v4119_v11, %s3292_s6  ;;  %1104 = vrot.lane.b32.xlu0 %v4119_v11, %s3293_s10 }
 0x39d   : > { %v4125_v13 = vpop.permute.xlu1 %1106  ;;  %v4127_v14 = vpop.permute.xlu0 %1102 }
 0x39e   : > { %1157 = vrot.lane.b32.xlu0 %v4127_v14, %s3292_s6 }
 0x3a1   : > { %v1109_v15 = vpop.permute.xlu1 %1108  ;;  %v4130_v16 = vpop.permute.xlu0 %1104 }
 0x3a2   : > { %1253 = vrot.lane.b32.xlu0 %v4125_v13, %s3292_s6  ;;  %1205 = vrot.lane.b32.xlu1 %v4130_v16, %s3292_s6  ;;  %v1115_v17 = vsel %vm1110_vm3, %v1109_v15, 0 }
 0x3a3   : > { %2395 = vmatpush3.bf16.xpose.msra.mxu1 %v1115_v17 }
 0x3a4   : > { %2406 = vmatprep.subr.bf16.mxu1 %v3288_v2 }
 0x3aa   : > { %2397 = vmatmul.mubr.msk.bf16.vlgmr.msra.gmra.mrb[0].mxu1 %vm1110_vm3, %v4119_v11 }
 0x3ab   : > { %2408 = vmatprep.mubr.msk.bf16.mxu1 %vm3289_vm1, %v3288_v2 }
 0x410   : > { %v1158_v18 = vpop.permute.xlu0 %1157 }
 0x411   : > { %v1163_v19 = vsel %vm1110_vm3, %v1158_v18, 0 }
 0x412   : > { %2401 = vmatpush3.bf16.xpose.msra.mxu0 %v1163_v19 }
 0x413   : > { %2412 = vmatprep.subr.bf16.mxu0 %v3288_v2 }
 0x414   : > { %v1206_v20 = vpop.permute.xlu1 %1205  ;;  %v1254_v22 = vpop.permute.xlu0 %1253 }
 0x415   : > { %v1211_v21 = vsel %vm1110_vm3, %v1206_v20, 0  ;;  %v1259_v23 = vsel %vm1110_vm3, %v1254_v22, 0 }
 0x416   : > { %2407 = vmatpush3.bf16.xpose.msra.mxu1 %v1211_v21 }
 0x417   : > { %2418 = vmatprep.subr.bf16.mxu1 %v3288_v2 }
 0x419   : > { %2403 = vmatmul.mubr.msk.bf16.vlgmr.msra.gmra.mrb[4].mxu0 %vm1110_vm3, %v4127_v14 }
 0x41a   : > { %2413 = vmatpush3.bf16.xpose.msra.mxu0 %v1259_v23  ;;  %2414 = vmatprep.mubr.msk.bf16.mxu0 %vm3289_vm1, %v3288_v2 }
 0x41b   : > { %2424 = vmatprep.subr.bf16.mxu0 %v3288_v2 }
 0x41d   : > { %2409 = vmatmul.mubr.msk.bf16.vlgmr.msra.gmra.mrb[4].mxu1 %vm1110_vm3, %v4130_v16 }
 0x41e   : > { %2420 = vmatprep.mubr.msk.bf16.mxu1 %vm3289_vm1, %v3288_v2 }
 0x421   : > { %2415 = vmatmul.mubr.msk.bf16.vlgmr.msra.gmra.mrb[8].mxu0 %vm1110_vm3, %v4125_v13 }
 0x422   : > { %2426 = vmatprep.mubr.msk.bf16.mxu0 %vm3289_vm1, %v3288_v2 }
 0x47d   : > { %v1151_v24 = vpop.f32.mrb[0].mxu1 }
 0x47e   : > { %v1301_v26 = vmul.f32 0.35355338, %v1151_v24  ;;  %v2398_v27 = vpop.f32.mrb[1].mxu1 }
 0x47f   : > { %v1154_v28 = vpop.f32.mrb[2].mxu1 }
 0x480   : > { %v2399_v29 = vpop.f32.mrb[3].mxu1  ;;  %v1311_v30 = vadd.f32 %v2316_v25, %v1301_v26 }
 0x482   : > { %v1315_v31 = vsel %vm1110_vm3, %v1311_v30, -inf }
 0x483   : > { %1316 = vmax.xlane.f32.xlu1 %v1315_v31 }
 0x4ec   : > { %v1199_v32 = vpop.f32.mrb[4].mxu0 }
 0x4ed   : > { %v1302_v33 = vmul.f32 0.35355338, %v1199_v32  ;;  %v2404_v34 = vpop.f32.mrb[5].mxu0 }
 0x4ee   : > { %v1202_v35 = vpop.f32.mrb[6].mxu0 }
 0x4ef   : > { %v2405_v36 = vpop.f32.mrb[7].mxu0  ;;  %v1312_v37 = vadd.f32 %v2316_v25, %v1302_v33 }
 0x4f0   : > { %v1247_v38 = vpop.f32.mrb[4].mxu1 }
 0x4f1   : > { %v1303_v39 = vmul.f32 0.35355338, %v1247_v38  ;;  %v2410_v40 = vpop.f32.mrb[5].mxu1  ;;  %v1318_v41 = vsel %vm1110_vm3, %v1312_v37, -inf }
 0x4f2   : > { %v1250_v42 = vpop.f32.mrb[6].mxu1  ;;  %1319 = vmax.xlane.f32.xlu0 %v1318_v41  ;;  %v2628_v40 = vld [vmem:[%s835_s4] sm:$0xff]  }
 0x4f3   : > { %v2411_v43 = vpop.f32.mrb[7].mxu1  ;;  %v1313_v44 = vadd.f32 %v2316_v25, %v1303_v39  ;;  %v2629_v42 = vld [vmem:[%s835_s4 + $0x8] sm:$0xff]   ;;  %s3297_s4 = smov 24  }
 0x4f4   : > { %v1295_v45 = vpop.f32.mrb[8].mxu0 }
 0x4f5   : > { %v1304_v46 = vmul.f32 0.35355338, %v1295_v45  ;;  %v2416_v47 = vpop.f32.mrb[9].mxu0  ;;  %v1321_v48 = vsel %vm1110_vm3, %v1313_v44, -inf }
 0x4f6   : > { %1322 = vmax.xlane.f32.xlu0 %v1321_v48  ;;  %v1298_v49 = vpop.f32.mrb[10].mxu0 }
 0x4f7   : > { %v2417_v50 = vpop.f32.mrb[11].mxu0  ;;  %v1314_v51 = vadd.f32 %v2316_v25, %v1304_v46 }
 0x4f9   : > { %v1324_v52 = vsel %vm1110_vm3, %v1314_v51, -inf }
 0x4fa   : > { %1325 = vmax.xlane.f32.xlu1 %v1324_v52 }
 0x50b   : > { %1412 = vrot.lane.b32.xlu1 %v4127_v14, %s3294_s3 }
 0x50c   : > { %1363 = vrot.lane.b32.xlu0 %v4119_v11, %s3294_s3 }
 0x510   : > { %v1317_v53 = vpop.xlane.xlu1 %1316 }
 0x511   : > { %v1327_v54 = vsub.f32 %v1311_v30, %v1317_v53 }
 0x513   : > { %v1331_v55 = vmul.f32 1.442695, %v1327_v54 }
 0x515   : > { %2636 = vpow2.f32 %v1331_v55 }
 0x51f   : > { %v2637_v56 = vpop.eup %2636 }
 0x520   : > { %v1339_v57 = vsel %vm1110_vm3, %v2637_v56, 0.0 }
 0x52b   : > { %1340 = vadd.xlane.f32.xlu0 %v1339_v57 }
 0x57f   : > { %v1320_v58 = vpop.xlane.xlu0 %1319 }
 0x580   : > { %v1328_v59 = vsub.f32 %v1312_v37, %v1320_v58 }
 0x582   : > { %v1333_v60 = vmul.f32 1.442695, %v1328_v59 }
 0x583   : > { %v1323_v61 = vpop.xlane.xlu0 %1322 }
 0x584   : > { %2638 = vpow2.f32 %v1333_v60  ;;  %v1329_v62 = vsub.f32 %v1313_v44, %v1323_v61  ;;  %v2324_v61 = vld [vmem:[%s843_s15] ss:$0 sm:$0xff]  ;;  %s4445_s15 = scalar_lea.vmem [#allocation19], %s4031_s8 }
 0x586   : > { %v1335_v63 = vmul.f32 1.442695, %v1329_v62 }
 0x587   : > { %v1364_v0 = vpop.permute.xlu0 %1363  ;;  %v1326_v1 = vpop.xlane.xlu1 %1325 }
 0x588   : > { %2640 = vpow2.f32 %v1335_v63  ;;  %v1370_v3 = vsel %vm1368_vm4, %v1364_v0, 0  ;;  %v1330_v5 = vsub.f32 %v1314_v51, %v1326_v1 }
 0x589   : > { %2419 = vmatpush3.bf16.msra.mxu1 %v1370_v3 }
 0x58a   : > { %v1337_v6 = vmul.f32 1.442695, %v1330_v5  ;;  %2430 = vmatprep.subr.bf16.mxu1 %v3288_v2 }
 0x58b   : > { %v1413_v7 = vpop.permute.xlu1 %1412 }
 0x58c   : > { %2642 = vpow2.f32 %v1337_v6  ;;  %v1418_v8 = vsel %vm1368_vm4, %v1413_v7, 0 }
 0x58d   : > { %2425 = vmatpush3.bf16.msra.mxu0 %v1418_v8 }
 0x58e   : > { %v2639_v9 = vpop.eup %2638  ;;  %2436 = vmatprep.subr.bf16.mxu0 %v3288_v2 }
 0x58f   : > { %v1342_v10 = vsel %vm1110_vm3, %v2639_v9, 0.0 }
 0x590   : > { %1343 = vadd.xlane.f32.xlu1 %v1342_v10 }
 0x592   : > { %v2641_v11 = vpop.eup %2640 }
 0x593   : > { %v1345_v12 = vsel %vm1110_vm3, %v2641_v11, 0.0 }
 0x594   : > { %1346 = vadd.xlane.f32.xlu0 %v1345_v12  ;;  %v2630_v12 = vld [vmem:[%s868_s22] sm:$0xff]  }
 0x596   : > { %v2643_v14 = vpop.eup %2642 }
 0x597   : > { %v1348_v15 = vsel %vm1110_vm3, %v2643_v14, 0.0 }
 0x598   : > { %1349 = vadd.xlane.f32.xlu1 %v1348_v15  ;;  %v2633_v15 = vld [vmem:[%s4069_s2 + $0x8] sm:$0xff]  }
 0x5a9   : > { %1460 = vrot.lane.b32.xlu1 %v4130_v16, %s3294_s3 }
 0x5aa   : > { %1508 = vrot.lane.b32.xlu0 %v4125_v13, %s3294_s3 }
 0x5b8   : > { %v1341_v17 = vpop.xlane.xlu0 %1340 }
 0x5b9   : > { %2644 = vrcp.f32 %v1341_v17 }
 0x5c3   : > { %v2645_v18 = vpop.eup %2644 }
 0x5c4   : > { %v1355_v19 = vmul.f32 %v2645_v18, %v2637_v56 }
 0x5c6   : > { %v1359_v20 = vpack.c.bf16 %v1355_v19, %v1355_v19 }
 0x5c8   : > { %2421 = vmatmul.mubr.msk.bf16.vlgmr.msra.gmra.mrb[8].mxu1 %vm1110_vm3, %v1359_v20 }
 0x5c9   : > { %2432 = vmatprep.mubr.msk.bf16.mxu1 %vm3289_vm1, %v3288_v2 }
 0x61d   : > { %v1344_v21 = vpop.xlane.xlu1 %1343 }
 0x61e   : > { %2646 = vrcp.f32 %v1344_v21  ;;  %v2328_v21 = vld [vmem:[%s851_s13] ss:$0 sm:$0xff]  ;;  %s4446_s13 = sld [smem:[#allocation46_spill]] }
 0x621   : > { %v1347_v22 = vpop.xlane.xlu0 %1346 }
 0x622   : > { %2648 = vrcp.f32 %v1347_v22 }
 0x624   : > { %p2342_p4 = scmp.ne.s32.totalorder %s4446_s13, 1 }
 0x625   : > { %v1350_v23 = vpop.xlane.xlu1 %1349  ;;  %v1509_v13 = vpop.permute.xlu0 %1508 }
 0x626   : > { %2650 = vrcp.f32 %v1350_v23  ;;  %v1514_v30 = vsel %vm1368_vm4, %v1509_v13, 0  ;;  %v2329_v23 = vld [vmem:[%s4444_s28] ss:$0 sm:$0xff]  ;;  %v2634_v13 = vld [vmem:[%s4069_s2 + $0x10] sm:$0xff]  }
 0x628   : > { %v2647_v16 = vpop.eup %2646 }
 0x629   : > { %v1356_v24 = vmul.f32 %v2647_v16, %v2639_v9  ;;  %v1461_v25 = vpop.permute.xlu1 %1460 }
 0x62a   : > { %v1466_v26 = vsel %vm1368_vm4, %v1461_v25, 0 }
 0x62b   : > { %2431 = vmatpush3.bf16.msra.mxu1 %v1466_v26  ;;  %v1360_v27 = vpack.c.bf16 %v1356_v24, %v1356_v24  ;;  %v2635_v26 = vld [vmem:[%s4069_s2 + $0x18] sm:$0xff]  }
 0x62c   : > { %v2649_v28 = vpop.eup %2648  ;;  %2442 = vmatprep.subr.bf16.mxu1 %v3288_v2 }
 0x62d   : > { %v1357_v29 = vmul.f32 %v2649_v28, %v2641_v11  ;;  %2427 = vmatmul.mubr.msk.bf16.vlgmr.msra.gmra.mrb[12].mxu0 %vm1110_vm3, %v1360_v27  ;;  %v2330_v27 = vld [vmem:[%s4445_s15] ss:$0 sm:$0xff] }
 0x62e   : > { %2437 = vmatpush3.bf16.msra.mxu0 %v1514_v30  ;;  %2438 = vmatprep.mubr.msk.bf16.mxu0 %vm3289_vm1, %v3288_v2 }
 0x62f   : > { %v1361_v31 = vpack.c.bf16 %v1357_v29, %v1357_v29  ;;  %2450 = vmatprep.subr.bf16.mxu0 %v3288_v2 }
 0x630   : > { %v2651_v32 = vpop.eup %2650 }
 0x631   : > { %v1358_v33 = vmul.f32 %v2651_v32, %v2643_v14  ;;  %2433 = vmatmul.mubr.msk.bf16.vlgmr.msra.gmra.mrb[12].mxu1 %vm1110_vm3, %v1361_v31  ;;  %v2631_v14 = vld [vmem:[%s868_s22 + $0x8] sm:$0xff]  }
 0x632   : > { %2446 = vmatprep.mubr.msk.bf16.mxu1 %vm3289_vm1, %v3288_v2  ;;  %2443 = vmatpush3.bf16.msra.mxu1 %v2628_v40 }
 0x633   : > { %v1362_v34 = vpack.c.bf16 %v1358_v33, %v1358_v33  ;;  %2444 = vmatprep.subr.bf16.mxu1 %v3288_v2 }
 0x635   : > { %2439 = vmatmul.mubr.msk.bf16.vlgmr.msra.gmra.mrb[16].mxu0 %vm1110_vm3, %v1362_v34 }
 0x636   : > { %2454 = vmatprep.mubr.msk.bf16.mxu0 %vm3289_vm1, %v3288_v2  ;;  %2445 = vmatpush3.bf16.msra.mxu1 %v2629_v42 }
 0x637   : > { %2458 = vmatprep.subr.bf16.mxu1 %v3288_v2  ;;  %2451 = vmatpush3.bf16.msra.mxu0 %v2630_v12 }
 0x638   : > { %2452 = vmatprep.subr.bf16.mxu0 %v3288_v2 }
 0x63b   : > { %2453 = vmatpush3.bf16.msra.mxu0 %v2631_v14 }
 0x69b   : > { %v1406_v35 = vpop.f32.mrb[8].mxu1 }
 0x69c   : > { %v1556_v36 = vpack.c.bf16 %v1406_v35, %v1406_v35  ;;  %v2422_v37 = vpop.f32.mrb[9].mxu1  ;;  %v2334_v35 = vld [vmem:[%s893_s14] ss:$0 sm:$0xff] }
 0x69d   : > { %v1409_v38 = vpop.f32.mrb[10].mxu1 }
 0x69e   : > { %1558 = vst.msk [vmem:[#allocation3] sm:$0xf] %vm1557_vm5, %v1556_v36  ;;  %v2423_v39 = vpop.f32.mrb[11].mxu1 }
 0x700   : > { %v1454_v41 = vpop.f32.mrb[12].mxu0 }
 0x701   : > { %v2353_v43 = vpack.c.bf16 %v1454_v41, %v1454_v41  ;;  %v2428_v44 = vpop.f32.mrb[13].mxu0 }
 0x702   : > { %v1457_v45 = vpop.f32.mrb[14].mxu0 }
 0x703   : > { %1563 = vrot.lane.b32.xlu1 %v2353_v43, %s3295_s30  ;;  %v2429_v46 = vpop.f32.mrb[15].mxu0 }
 0x704   : > { %v1502_v47 = vpop.f32.mrb[12].mxu1 }
 0x705   : > { %v2354_v48 = vpack.c.bf16 %v1502_v47, %v1502_v47  ;;  %v2434_v49 = vpop.f32.mrb[13].mxu1 }
 0x706   : > { %v1505_v50 = vpop.f32.mrb[14].mxu1 }
 0x707   : > { %1572 = vrot.lane.b32.xlu0 %v2354_v48, %s3296_s12  ;;  %v2435_v51 = vpop.f32.mrb[15].mxu1 }
 0x708   : > { %v1550_v52 = vpop.f32.mrb[16].mxu0  ;;  %v2340_v51 = vld [vmem:[%s901_s24] ss:$0 sm:$0xff] }
 0x709   : > { %v2355_v53 = vpack.c.bf16 %v1550_v52, %v1550_v52  ;;  %v2440_v54 = vpop.f32.mrb[17].mxu0 }
 0x70a   : > { %v1553_v55 = vpop.f32.mrb[18].mxu0 }
 0x70b   : > { %1581 = vrot.lane.b32.xlu1 %v2355_v53, %s3297_s4  ;;  %v2441_v56 = vpop.f32.mrb[19].mxu0  ;;  %v2341_v53 = vld [vmem:[%s909_s21] ss:$0 sm:$0xff] }
 0x775   : > { %v1564_v57 = vpop.permute.xlu1 %1563 }
 0x776   : > { %1567 = vst.msk [vmem:[#allocation3] sm:$0xf] %vm1566_vm6, %v1564_v57 }
 0x779   : > { %v1573_v58 = vpop.permute.xlu0 %1572 }
 0x77a   : > { %1576 = vst.msk [vmem:[#allocation3] sm:$0xf] %vm1575_vm7, %v1573_v58 }
 0x77d   : > { %v1582_v59 = vpop.permute.xlu1 %1581 }
 0x77e   : > { %1585 = vst.msk [vmem:[#allocation3] sm:$0xf] %vm1584_vm8, %v1582_v59 }
 0x785   : > { %v1586_v60 = vld [vmem:[#allocation3] sm:$0xf] }
 0x786   : > { %2447 = vmatmul.mubr.msk.bf16.vlgmr.msra.gmra.mrb[16].mxu1 %vm1056_vm2, %v1586_v60 }
 0x787   : > { %2466 = vmatprep.mubr.msk.bf16.mxu1 %vm3289_vm1, %v3288_v2 }
 0x859   : > { %v1647_v62 = vpop.f32.mrb[16].mxu1 }
 0x85a   : > { %v1648_v63 = vadd.f32 %v2324_v61, %v1647_v62  ;;  %v2448_v0 = vpop.f32.mrb[17].mxu1 }
 0x85b   : > { %v1650_v1 = vpop.f32.mrb[18].mxu1 }
 0x85c   : > { %v2449_v3 = vpop.f32.mrb[19].mxu1  ;;  %v1653_v5 = vadd.f32 %v1648_v63, %v4106_v4  ;;  %v2632_v4 = vld [vmem:[%s4069_s2] sm:$0xff]  }
 0x85d   : > { %2459 = vmatpush3.bf16.msra.mxu1 %v2632_v4  ;;  %v2343_v3 = vld [vmem:[#allocation27] ss:$0 sm:$0xff] (!%p2342_p4) }
 0x85e   : > { %v1656_v6 = vsel %vm1056_vm2, %v1653_v5, 0.0  ;;  %2460 = vmatprep.subr.bf16.mxu1 %v3288_v2 }
 0x85f   : > { %1657 = vadd.xlane.f32.xlu0 %v1656_v6  ;;  %v2344_v6 = vld [vmem:[#allocation28] ss:$0 sm:$0xff] (!%p2342_p4) }
 0x861   : > { %2461 = vmatpush3.bf16.msra.mxu1 %v2633_v15 }
 0x862   : > { %2462 = vmatprep.subr.bf16.mxu1 %v3288_v2 }
 0x865   : > { %2463 = vmatpush3.bf16.msra.mxu1 %v2634_v13 }
 0x866   : > { %2464 = vmatprep.subr.bf16.mxu1 %v3288_v2 }
 0x869   : > { %2465 = vmatpush3.bf16.msra.mxu1 %v2635_v26 }
 0x8ec   : > { %v1658_v7 = vpop.xlane.xlu0 %1657 }
 0x8ed   : > { %v1660_v8 = vmul.f32 0.03125, %v1658_v7 }
 0x8ef   : > { %v1661_v9 = vsub.f32 %v1653_v5, %v1660_v8 }
 0x8f1   : > { %v1662_v10 = vmul.f32 %v1661_v9, %v1661_v9 }
 0x8f3   : > { %v1663_v11 = vsel %vm1056_vm2, %v1662_v10, 0.0 }
 0x8f4   : > { %1664 = vadd.xlane.f32.xlu1 %v1663_v11 }
 0x981   : > { %v1665_v17 = vpop.xlane.xlu1 %1664 }
 0x982   : > { %v1666_v18 = vmul.f32 0.03125, %v1665_v17 }
 0x984   : > { %v1667_v19 = vadd.f32 1e-05, %v1666_v18 }
 0x986   : > { %2652 = vrsqrt.f32 %v1667_v19 }
 0x990   : > { %v2653_v20 = vpop.eup %2652 }
 0x991   : > { %v1669_v22 = vmul.f32 %v2653_v20, %v1661_v9 }
 0x993   : > { %v1676_v16 = vmul.f32 %v2328_v21, %v1669_v22 }
 0x995   : > { %v1683_v24 = vadd.f32 %v2329_v23, %v1676_v16 }
 0x997   : > { %v1684_v25 = vpack.c.bf16 %v1683_v24, %v1683_v24 }
 0x999   : > { %2455 = vmatmul.mubr.msk.bf16.vlgmr.msra.gmra.mrb[20].mxu0 %vm1056_vm2, %v1684_v25 }
 0xa6c   : > { %v1745_v28 = vpop.f32.mrb[20].mxu0 }
 0xa6d   : > { %v1746_v29 = vadd.f32 %v2330_v27, %v1745_v28  ;;  %v2456_v30 = vpop.f32.mrb[21].mxu0 }
 0xa6e   : > { %v1748_v31 = vpop.f32.mrb[22].mxu0 }
 0xa6f   : > { %v1751_v32 = vmax.f32 %v1746_v29, 0.0  ;;  %v2457_v33 = vpop.f32.mrb[23].mxu0 }
 0xa71   : > { %v1752_v34 = vpack.c.bf16 %v1751_v32, %v1751_v32 }
 0xa73   : > { %2467 = vmatmul.mubr.msk.bf16.vlgmr.msra.gmra.mrb[20].mxu1 %vm1792_vm9, %v1752_v34 }
 0xb46   : > { %v1830_v36 = vpop.f32.mrb[20].mxu1 }
 0xb47   : > { %v1831_v37 = vadd.f32 %v2334_v35, %v1830_v36  ;;  %v2468_v38 = vpop.f32.mrb[21].mxu1 }
 0xb48   : > { %v1833_v39 = vpop.f32.mrb[22].mxu1 }
 0xb49   : > { %v2469_v2 = vpop.f32.mrb[23].mxu1  ;;  %v1836_v40 = vadd.f32 %v1831_v37, %v1683_v24 }
 0xb4b   : > { %v1839_v41 = vsel %vm1056_vm2, %v1836_v40, 0.0 }
 0xb4c   : > { %1840 = vadd.xlane.f32.xlu0 %v1839_v41 }
 0xbd9   : > { %v1841_v42 = vpop.xlane.xlu0 %1840 }
 0xbda   : > { %v1842_v43 = vmul.f32 0.03125, %v1841_v42 }
 0xbdc   : > { %v1843_v44 = vsub.f32 %v1836_v40, %v1842_v43 }
 0xbde   : > { %v1844_v45 = vmul.f32 %v1843_v44, %v1843_v44 }
 0xbe0   : > { %v1845_v46 = vsel %vm1056_vm2, %v1844_v45, 0.0 }
 0xbe1   : > { %1846 = vadd.xlane.f32.xlu0 %v1845_v46 }
 0xc6e   : > { %v1847_v47 = vpop.xlane.xlu0 %1846 }
 0xc6f   : > { %v1848_v48 = vmul.f32 0.03125, %v1847_v47 }
 0xc71   : > { %v1849_v49 = vadd.f32 1e-05, %v1848_v48 }
 0xc73   : > { %2654 = vrsqrt.f32 %v1849_v49 }
 0xc7d   : > { %v2655_v50 = vpop.eup %2654 }
 0xc7e   : > { %v1851_v52 = vmul.f32 %v2655_v50, %v1843_v44  ;;  %1870 = sbr.rel (%p2342_p4) target bundleno = 3518 (0xdbe), region = 156 }
 0xc80   : > { %v1858_v54 = vmul.f32 %v2340_v51, %v1851_v52 }
 0xc82   : > { %v1865_v55 = vadd.f32 %v2341_v53, %v1858_v54 }
 0xc84   : > { %1866 = vst.msk [vmem:[#allocation2] sm:$0xff] %vm1056_vm2, %v1865_v55  ;;  %v1873_v56 = vsel (!%p2342_p4), %vm1056_vm2, %v1865_v55, 0.0 }
 0xc85   : > { %1874 = vadd.xlane.f32.xlu0 %v1873_v56 }
 0xd12   : > { %v1875_v57 = vpop.xlane.xlu0 %1874 }
 0xd13   : > { %v1876_v58 = vmul.f32 0.03125, %v1875_v57 }
 0xd15   : > { %v1877_v59 = vsub.f32 %v1865_v55, %v1876_v58 }
 0xd17   : > { %v1878_v60 = vmul.f32 %v1877_v59, %v1877_v59 }
 0xd19   : > { %v1879_v61 = vsel %vm1056_vm2, %v1878_v60, 0.0 }
 0xd1a   : > { %1880 = vadd.xlane.f32.xlu0 %v1879_v61 }
 0xda7   : > { %v1881_v62 = vpop.xlane.xlu0 %1880 }
 0xda8   : > { %v1882_v63 = vmul.f32 0.03125, %v1881_v62 }
 0xdaa   : > { %v1883_v0 = vadd.f32 1e-05, %v1882_v63 }
 0xdac   : > { %2656 = vrsqrt.f32 %v1883_v0 }
 0xdb6   : > { %v2657_v1 = vpop.eup %2656 }
 0xdb7   : > { %v1885_v5 = vmul.f32 %v2657_v1, %v1877_v59 }
 0xdb9   : > { %v1892_v7 = vmul.f32 %v2343_v3, %v1885_v5 }
 0xdbb   : > { %v1899_v8 = vadd.f32 %v2344_v6, %v1892_v7 }
 0xdbd   : > { %1900 = vst.msk [vmem:[%s4094_s16] sm:$0xff] %vm1056_vm2, %v1899_v8 }
 0xdbe PF: > { %s4447_s8 = sld [smem:[#allocation47_spill]]  ;;  %s4448_s21 = sld [smem:[#allocation55_spill]] }
 0xdbf   : > { %s4449_s27 = sld [smem:[#allocation73_spill]]  ;;  %s1915_s11 = sshll.u32 %s4094_s16, 4  ;;  %s1916_s11 = int_to_ptr.vmem [resolvable:$true] %s1915_s11 }
 0xdc0   : > { %s1902_s26 = scalar_lea.sflag [#allocation6], %s4009_s17  ;;  %s3106_s18 = scalar_lea.vmem %s1916_s11, 128 }
 0xdc1   : > { %p3107_p11 = scmp.ne.s32.totalorder %s1916_s11, %s3106_s18  ;;  %s3298_s6 = smov [#allocation30]  }
 0xdc2   : > { %s3110_s10 = sshll.u32 %s3298_s6, 4  ;;  %s3111_s10 = int_to_ptr.vmem [resolvable:$false] %s3110_s10 }
 0xdc3   : > { %s3112_s3 = scalar_lea.vmem %s3111_s10, 256  ;;  %p3113_p0 = scmp.lt.s32.totalorder %s1916_s11, %s3111_s10 }
 0xdc4   : > { %s2346_s22 = sshll.u32 %s4447_s8, 7  ;;  %p4451_p3 = scmp.ne.s32.totalorder %s4448_s21, 0 }
 0xdc5   : > { %s4450_s14 = smov %s4449_s27  ;;  %s4247_s5 = scalar_lea.hbm %s4449_s27, %s2346_s22 }
 0xdc6   : > { %p3108_p9 = pnand %p3107_p11, %p4451_p3  ;;  %p3114_p13 = scmp.lt.s32.totalorder %s3112_s3, %s3106_s18 }
 0xdc8   : > { %p3109_p7 = pneg %p3108_p9  ;;  %p3115_p8 = por %p3114_p13, %p3113_p0 }
 0xdca   : > { %p3116_p5 = pnand %p3115_p8, %p3109_p7 }
 0xdcc   : > { %3119 = shalt.err (!%p3116_p5)
}
 0xdcd   : > { %s3120_s17 = scalar_lea.hbm %s4247_s5, 128  ;;  %s3124_s12 = scalar_lea.hbm %s4450_s14, 256 }
 0xdce   : > { %p3121_p2 = scmp.ne.s32.totalorder %s4247_s5, %s3120_s17  ;;  %p3125_p12 = scmp.lt.u32.totalorder %s4247_s5, %s4450_s14 }
 0xdcf   : > { %p3126_p6 = scmp.lt.u32.totalorder %s3124_s12, %s3120_s17  ;;  %p3128_p11 = scmp.lt.u32.totalorder %s3120_s17, %s4247_s5 }
 0xdd0   : > { %p3122_p10 = pnand %p3121_p2, %p4451_p3 }
 0xdd1   : > { %p3127_p4 = por %p3126_p6, %p3125_p12 }
 0xdd2   : > { %p3123_p1 = pneg %p3122_p10 }
 0xdd3   : > { %p3129_p9 = por %p3128_p11, %p3127_p4 }
 0xdd5   : > { %p3130_p7 = pnand %p3129_p9, %p3123_p1 }
 0xdd7   : > { %3133 = shalt.err (!%p3130_p7)
}
 0xdd8   : > { %2506 = dma.vmem_to_hbm [thread:$0]  (%p4451_p3), %s1916_s11, 128, %s4247_s5, %s1902_s26  }
 0xdd9 PF: > { %s4452_s15 = sld [smem:[#allocation44_spill]]  ;;  %s4453_s13 = sld [smem:[#allocation56_spill]] }
 0xdda   : > { %p2523_p0 = scmp.ge.s32.totalorder %s3268_s0, 2 }
 0xddf   : > { %s1927_s8 = sand.u32 1, %s4452_s15   ;;  %p4454_p13 = scmp.ne.s32.totalorder %s4453_s13, 0 }
 0xde0   : > { %s1928_s22 = scalar_lea.sflag [#allocation6], %s1927_s8 }
 0xde1   : > { %p2516_p8 = pnand %p2523_p0, %p4454_p13 }
 0xde3   : > { %3223 = dma.done.wait (!%p2516_p8), %s1928_s22, 128  }
 0xde4   : > { %3225 = vsyncadd (!%p2516_p8), %s1928_s22, 4294967168  ;;  %s54_s0 = sadd.s32 1, %s3268_s0   ;;  %s4455_s21 = sld [smem:[#allocation43_spill]] }
 0xde5   : > { %p51_p5 = scmp.ge.s32.totalorder %s54_s0, 6   ;;  %s4456_s24 = sld [smem:[#allocation52_spill]] }
 0xde6   : > { %s4457_s2 = sld [smem:[#allocation45_spill]]  ;;  %s4458_s26 = sld [smem:[#allocation53_spill]] }
 0xde7   : > { %s4459_s28 = sld [smem:[#allocation48_spill]]  ;;  %s4460_s5 = sld [smem:[#allocation50_spill]] }
 0xde8   : > { %s4461_s30 = sld [smem:[#allocation51_spill]]  ;;  %s4462_s22 = smov %s3236_s23 }
 0xde9   : > { %s4466_s27 = smov %s3260_s29  ;;  %53 = sbr.rel (!%p51_p5) target bundleno = 42 (0x2a), region = 302 }
 0xdeb   : > { %s4463_s23 = smov %s4456_s24  ;;  %s4464_s24 = smov %s3244_s25 }
 0xdec   : > { %s4465_s25 = smov %s4457_s2 }
 0xded   : > { %s4467_s29 = smov %s4460_s5 }
 0xdf0   :  { %1933 = vsyncpa [#allocation5], 1 }
 0xdf1   :  { %1935 = vsyncpa [#allocation5 + $0x1], 1 }
 0xdf2   :  { %1936 = vsyncpa [#allocation8], 1 }
 0xdf3   :  { %1938 = vsyncpa [#allocation8 + $0x1], 1 }
 0xdf4   :  { %1939 = vsyncpa [#allocation11], 1 }
 0xdf5   :  { %1941 = vsyncpa [#allocation11 + $0x1], 1 }
 0xdf6   :  { %1942 = vsyncpa [#allocation14], 1 }
 0xdf7   :  { %1944 = vsyncpa [#allocation14 + $0x1], 1 }
 0xdf8   :  { %1945 = vsyncpa [#allocation17], 1 }
 0xdf9   :  { %1947 = vsyncpa [#allocation17 + $0x1], 1 }
 0xdfa   :  { %1948 = vsyncpa [#allocation20], 1 }
 0xdfb   :  { %1950 = vsyncpa [#allocation20 + $0x1], 1 }
 0xdfc   :  { %1951 = vsyncpa [#allocation23], 1 }
 0xdfd   :  { %1953 = vsyncpa [#allocation23 + $0x1], 1 }
 0xdfe   :  { %1954 = vsyncpa [#allocation26], 1 }
 0xdff   :  { %1956 = vsyncpa [#allocation26 + $0x1], 1 }
 0xe00   :  { %1957 = vsyncpa [#allocation29], 1 }
 0xe01   :  { %1958 = vsyncpa [#allocation6], 1 }
 0xe02   :  { %1960 = vsyncpa [#allocation6 + $0x1], 1 }

</bundles_post_ra>
